<compile_context>
chip_gen: v7x
topology: tpu7x:2x2x1
jax: 0.10.0
libtpu: 0.0.40
codegen_flags: <defaults>
</compile_context>

<pallas_src>
import jax
import jax.numpy as jnp
from jax.experimental import pallas as pl
from jax.experimental.pallas import tpu as pltpu

INPUT_DIM = 74
H1, H2, H3 = 500, 1000, 200
OUTPUT_DIM = 1

# Packed "tail" parameter layout (all segment starts are 128-lane aligned):
#   [ b1 (500) pad->512 | b2 (1000) pad->1024 | b3 (200) pad->256 | w4 row (200) pad->256 | b4 (1) pad->128 ]
_B1_OFF, _B1_SEG = 0, 512
_B2_OFF, _B2_SEG = 512, 1024
_B3_OFF, _B3_SEG = 1536, 256
_W4_OFF, _W4_SEG = 1792, 256
_B4_OFF, _B4_SEG = 2048, 128
_PACK_LEN = _B1_SEG + _B2_SEG + _B3_SEG + _W4_SEG + _B4_SEG  # 2176


def mlp_kernel(x_ref, w1_ref, w2_ref, w3_ref, tail_ref, o_ref):
    x = x_ref[...]  # (TB, 74)

    # layer 1: (TB,74) @ (74,500) + b1
    h = jnp.dot(x, w1_ref[...], preferred_element_type=jnp.float32)
    h = h + tail_ref[0:1, _B1_OFF:_B1_OFF + H1]

    # layer 2: (TB,500) @ (500,1000) + b2
    h = jnp.dot(h, w2_ref[...], preferred_element_type=jnp.float32)
    h = h + tail_ref[0:1, _B2_OFF:_B2_OFF + H2]

    # layer 3: (TB,1000) @ (1000,200) + b3
    h = jnp.dot(h, w3_ref[...], preferred_element_type=jnp.float32)
    h = h + tail_ref[0:1, _B3_OFF:_B3_OFF + H3]

    # layer 4: N=1 -> VPU multiply + lane reduction instead of a 1-column MXU matmul
    w4_row = tail_ref[0:1, _W4_OFF:_W4_OFF + H3]                # (1, 200)
    b4 = tail_ref[0:1, _B4_OFF:_B4_OFF + OUTPUT_DIM]            # (1, 1)
    out = jnp.sum(h * w4_row, axis=-1, keepdims=True) + b4      # (TB, 1)

    o_ref[...] = out.astype(o_ref.dtype)


def _pack_tail(b1, b2, b3, w4, b4):
    """Pack small parameters into one lane-aligned (1, 2176) f32 buffer."""
    def seg(v, size):
        v = v.reshape(1, -1).astype(jnp.float32)
        return jnp.pad(v, ((0, 0), (0, size - v.shape[1])))
    return jnp.concatenate(
        [seg(b1, _B1_SEG), seg(b2, _B2_SEG), seg(b3, _B3_SEG),
         seg(w4, _W4_SEG), seg(b4, _B4_SEG)], axis=1)


def mlp_forward(x, params, *, block_batch=256):
    w1, b1, w2, b2, w3, b3, w4, b4 = params
    B = x.shape[0]

    # Batch tile: multiple of 8 sublanes, capped at block_batch; pad batch to a tile multiple.
    tb = min(block_batch, max(8, ((B + 7) // 8) * 8))
    bp = ((B + tb - 1) // tb) * tb
    if bp != B:
        x = jnp.pad(x, ((0, bp - B), (0, 0)))
    n_tiles = bp // tb

    tail = _pack_tail(b1, b2, b3, w4, b4)

    # Resident blocks: constant index_map keeps weights in VMEM across the whole grid.
    resident = lambda shape: pl.BlockSpec(shape, lambda i: (0, 0))

    flops = 2 * bp * (INPUT_DIM * H1 + H1 * H2 + H2 * H3 + H3 * OUTPUT_DIM)
    weight_bytes = 4 * (INPUT_DIM * H1 + H1 * H2 + H2 * H3 + _PACK_LEN)
    bytes_accessed = weight_bytes + 4 * bp * (INPUT_DIM + OUTPUT_DIM)

    out = pl.pallas_call(
        mlp_kernel,
        out_shape=jax.ShapeDtypeStruct((bp, OUTPUT_DIM), jnp.float32),
        grid_spec=pltpu.PrefetchScalarGridSpec(
            num_scalar_prefetch=0,
            grid=(n_tiles,),
            in_specs=[
                pl.BlockSpec((tb, INPUT_DIM), lambda i: (i, 0)),   # x: streamed per tile
                resident(w1.shape),                                # (74, 500)
                resident(w2.shape),                                # (500, 1000)
                resident(w3.shape),                                # (1000, 200)
                resident(tail.shape),                              # (1, 2176) packed tail
            ],
            out_specs=pl.BlockSpec((tb, OUTPUT_DIM), lambda i: (i, 0)),
        ),
        compiler_params=pltpu.CompilerParams(
            dimension_semantics=("parallel",),        # shard batch tiles across TCs (v7x)
            vmem_limit_bytes=16 << 20,
        ),
        cost_estimate=pl.CostEstimate(
            flops=flops, transcendentals=0, bytes_accessed=bytes_accessed),
    )(x, w1, w2, w3, tail)

    return out[:B]


def init_params(key):
    """Deterministic init mimicking nn.Linear default (uniform +/- 1/sqrt(fan_in)).
    Weights stored as (in_features, out_features); biases as (1, out_features)."""
    dims = [(INPUT_DIM, H1), (H1, H2), (H2, H3), (H3, OUTPUT_DIM)]
    params = []
    keys = jax.random.split(key, 2 * len(dims))
    for i, (fan_in, fan_out) in enumerate(dims):
        bound = 1.0 / (fan_in ** 0.5)
        w = jax.random.uniform(keys[2 * i], (fan_in, fan_out),
                               minval=-bound, maxval=bound, dtype=jnp.float32)
        b = jax.random.uniform(keys[2 * i + 1], (1, fan_out),
                               minval=-bound, maxval=bound, dtype=jnp.float32)
        params += [w, b]
    return tuple(params)


def reference_forward(x, params):
    w1, b1, w2, b2, w3, b3, w4, b4 = params
    h = x @ w1 + b1
    h = h @ w2 + b2
    h = h @ w3 + b3
    return h @ w4 + b4


if __name__ == "__main__":
    key = jax.random.PRNGKey(0)
    k_x, k_p = jax.random.split(key)
    params = init_params(k_p)

    # Small batch (matches original usage) and a larger batch that exercises the
    # multi-tile grid + padding path (384 -> padded to 512, 2 grid steps).
    for batch in (8, 384):
        x = jax.random.normal(jax.random.fold_in(k_x, batch),
                              (batch, INPUT_DIM), dtype=jnp.float32)
        out = jax.block_until_ready(mlp_forward(x, params))
        ref = reference_forward(x, params)
        assert out.shape == (batch, OUTPUT_DIM)
        assert jnp.allclose(out, ref, atol=1e-4, rtol=1e-4), f"mismatch vs JAX reference at batch={batch}"

    print("KERNEL_OK")
</pallas_src>

<mosaic_0001>
module attributes {stable_mosaic.version = 11 : i64} {
  func.func @mlp_kernel(%arg0: i32, %arg1: memref<8x74xf32, #tpu.memory_space<vmem>>, %arg2: memref<74x500xf32, #tpu.memory_space<vmem>>, %arg3: memref<500x1000xf32, #tpu.memory_space<vmem>>, %arg4: memref<1000x200xf32, #tpu.memory_space<vmem>>, %arg5: memref<1x2176xf32, #tpu.memory_space<vmem>>, %arg6: memref<8x1xf32, #tpu.memory_space<vmem>>) attributes {dimension_semantics = [#tpu.dimension_semantics<parallel>], iteration_bounds = array<i64: 1>, scalar_prefetch = 0 : i64, scratch_operands = 0 : i64, tpu.core_type = #tpu.core_type<tc>, window_params = [{transform_indices = @transform_0, window_bounds = array<i64: 8, 74>}, {pipeline_mode = #tpu.pipeline_mode<synchronous>, transform_indices = @transform_1, window_bounds = array<i64: 74, 500>}, {pipeline_mode = #tpu.pipeline_mode<synchronous>, transform_indices = @transform_2, window_bounds = array<i64: 500, 1000>}, {pipeline_mode = #tpu.pipeline_mode<synchronous>, transform_indices = @transform_3, window_bounds = array<i64: 1000, 200>}, {pipeline_mode = #tpu.pipeline_mode<synchronous>, transform_indices = @transform_4, window_bounds = array<i64: 1, 2176>}, {transform_indices = @transform_5, window_bounds = array<i64: 8, 1>}]} {
    %c0 = arith.constant 0 : index
    %c0_0 = arith.constant 0 : index
    %0 = vector.load %arg1[%c0, %c0_0] : memref<8x74xf32, #tpu.memory_space<vmem>>, vector<8x74xf32>
    %c0_1 = arith.constant 0 : index
    %c0_2 = arith.constant 0 : index
    %1 = vector.load %arg2[%c0_1, %c0_2] : memref<74x500xf32, #tpu.memory_space<vmem>>, vector<74x500xf32>
    %cst = arith.constant dense<0.000000e+00> : vector<8x500xf32>
    %2 = tpu.matmul %0, %1, %cst {dimension_numbers = #tpu.dot_dimension_numbers<[1], [0], [0], [1], [0, 0, 1, 1], [], []>} : vector<8x74xf32>, vector<74x500xf32>, vector<8x500xf32> -> vector<8x500xf32>
    %c0_3 = arith.constant 0 : index
    %c0_4 = arith.constant 0 : index
    %3 = vector.load %arg5[%c0_3, %c0_4] : memref<1x2176xf32, #tpu.memory_space<vmem>>, vector<1x500xf32>
    %4 = vector.broadcast %3 : vector<1x500xf32> to vector<8x500xf32>
    %5 = arith.addf %2, %4 : vector<8x500xf32>
    %c0_5 = arith.constant 0 : index
    %c0_6 = arith.constant 0 : index
    %6 = vector.load %arg3[%c0_5, %c0_6] : memref<500x1000xf32, #tpu.memory_space<vmem>>, vector<500x1000xf32>
    %cst_7 = arith.constant dense<0.000000e+00> : vector<8x1000xf32>
    %7 = tpu.matmul %5, %6, %cst_7 {dimension_numbers = #tpu.dot_dimension_numbers<[1], [0], [0], [1], [0, 0, 1, 1], [], []>} : vector<8x500xf32>, vector<500x1000xf32>, vector<8x1000xf32> -> vector<8x1000xf32>
    %c0_8 = arith.constant 0 : index
    %c512 = arith.constant 512 : index
    %8 = vector.load %arg5[%c0_8, %c512] : memref<1x2176xf32, #tpu.memory_space<vmem>>, vector<1x1000xf32>
    %9 = vector.broadcast %8 : vector<1x1000xf32> to vector<8x1000xf32>
    %10 = arith.addf %7, %9 : vector<8x1000xf32>
    %c0_9 = arith.constant 0 : index
    %c0_10 = arith.constant 0 : index
    %11 = vector.load %arg4[%c0_9, %c0_10] : memref<1000x200xf32, #tpu.memory_space<vmem>>, vector<1000x200xf32>
    %cst_11 = arith.constant dense<0.000000e+00> : vector<8x200xf32>
    %12 = tpu.matmul %10, %11, %cst_11 {dimension_numbers = #tpu.dot_dimension_numbers<[1], [0], [0], [1], [0, 0, 1, 1], [], []>} : vector<8x1000xf32>, vector<1000x200xf32>, vector<8x200xf32> -> vector<8x200xf32>
    %c0_12 = arith.constant 0 : index
    %c1536 = arith.constant 1536 : index
    %13 = vector.load %arg5[%c0_12, %c1536] : memref<1x2176xf32, #tpu.memory_space<vmem>>, vector<1x200xf32>
    %14 = vector.broadcast %13 : vector<1x200xf32> to vector<8x200xf32>
    %15 = arith.addf %12, %14 : vector<8x200xf32>
    %c0_13 = arith.constant 0 : index
    %c1792 = arith.constant 1792 : index
    %16 = vector.load %arg5[%c0_13, %c1792] : memref<1x2176xf32, #tpu.memory_space<vmem>>, vector<1x200xf32>
    %c0_14 = arith.constant 0 : index
    %c2048 = arith.constant 2048 : index
    %17 = vector.load %arg5[%c0_14, %c2048] : memref<1x2176xf32, #tpu.memory_space<vmem>>, vector<1x1xf32>
    %18 = vector.broadcast %16 : vector<1x200xf32> to vector<8x200xf32>
    %19 = arith.mulf %15, %18 : vector<8x200xf32>
    %cst_15 = arith.constant dense<0.000000e+00> : vector<8xf32>
    %20 = vector.multi_reduction <add>, %19, %cst_15 [1] : vector<8x200xf32> to vector<8xf32>
    %21 = vector.shape_cast %20 : vector<8xf32> to vector<8x1xf32>
    %22 = vector.broadcast %17 : vector<1x1xf32> to vector<8x1xf32>
    %23 = arith.addf %21, %22 : vector<8x1xf32>
    %c0_16 = arith.constant 0 : index
    %c0_17 = arith.constant 0 : index
    %24 = vector.load %arg6[%c0_16, %c0_17] : memref<8x1xf32, #tpu.memory_space<vmem>>, vector<8x1xf32>
    tpu.vector_store %arg6[%c0_16, %c0_17], %23 {strides = array<i32>} : memref<8x1xf32, #tpu.memory_space<vmem>>, vector<8x1xf32>,
    return
  }
  func.func @transform_0(%arg0: i32) -> (i32, i32) {
    %c0_i32 = arith.constant 0 : i32
    %c0_i32_0 = arith.constant 0 : i32
    return %arg0, %c0_i32 : i32, i32
  }
  func.func @transform_1(%arg0: i32) -> (i32, i32) {
    %c0_i32 = arith.constant 0 : i32
    %c0_i32_0 = arith.constant 0 : i32
    %c0_i32_1 = arith.constant 0 : i32
    return %c0_i32, %c0_i32_0 : i32, i32
  }
  func.func @transform_2(%arg0: i32) -> (i32, i32) {
    %c0_i32 = arith.constant 0 : i32
    %c0_i32_0 = arith.constant 0 : i32
    %c0_i32_1 = arith.constant 0 : i32
    return %c0_i32, %c0_i32_0 : i32, i32
  }
  func.func @transform_3(%arg0: i32) -> (i32, i32) {
    %c0_i32 = arith.constant 0 : i32
    %c0_i32_0 = arith.constant 0 : i32
    %c0_i32_1 = arith.constant 0 : i32
    return %c0_i32, %c0_i32_0 : i32, i32
  }
  func.func @transform_4(%arg0: i32) -> (i32, i32) {
    %c0_i32 = arith.constant 0 : i32
    %c0_i32_0 = arith.constant 0 : i32
    %c0_i32_1 = arith.constant 0 : i32
    return %c0_i32, %c0_i32_0 : i32, i32
  }
  func.func @transform_5(%arg0: i32) -> (i32, i32) {
    %c0_i32 = arith.constant 0 : i32
    %c0_i32_0 = arith.constant 0 : i32
    return %arg0, %c0_i32 : i32, i32
  }
}

</mosaic_0001>

<bundles_post_ra>
// kernel: tpu_custom_call.1
= control target key start
LH: loop header
LB: loop body
LE: loop exit
PB: predicated region body
PF: predicated region fallthrough
CT: control target
= control target key end

     0   :  { %v2802_v3 = vmov 0.0   ;;  %vm87_vm0 = vcmask 1041408   ;;  %vm2803_vm1 = vmmov 1   ;;  %vm83_vm3 = vcmask 605184   ;;  %s5343_s1 = inlined_call_operand.vmem [shape: f32[74,500], index: 1, kind: input, shape index: {}]   ;;  %s5344_s2 = inlined_call_operand.vmem [shape: f32[500,1000], index: 2, kind: input, shape index: {}]   ;;  %s5345_s0 = inlined_call_operand.vmem [shape: f32[8,74], index: 0, kind: input, shape index: {}]   ;;  %s5346_s4 = inlined_call_operand.vmem [shape: f32[1,2176], index: 4, kind: input, shape index: {}]   ;;  %s5347_s3 = inlined_call_operand.vmem [shape: f32[1000,200], index: 3, kind: input, shape index: {}]   ;;  %s5348_s5 = inlined_call_operand.vmem [shape: f32[8,1], index: 5, kind: output, shape index: {}]  }
   0x1   :  { %v22_v0 = vld [vmem:[%s5343_s1 + $0x8] sm:$0xff]  ;;  %v21_v2 = vld [vmem:[%s5343_s1] sm:$0xff]  ;;  %164 = vmatprep.mubr.f32.mxu0 %v2802_v3  ;;  %235 = vmatprep.mubr.f32.mxu1 %v2802_v3  ;;  %v24_v22 = vld [vmem:[%s5343_s1 + $0x18] sm:$0xff]  ;;  %vm788_vm4 = vcmask 949248   ;;  %vm792_vm5 = vcmask 1043456   ;;  %vm1647_vm6 = vcmask 850944  }
   0x2   :  { %v26_v1 = vld [vmem:[%s5343_s1 + $0x28] sm:$0xff]  ;;  %v25_v5 = vld [vmem:[%s5343_s1 + $0x20] sm:$0xff]  ;;  %v28_v23 = vld [vmem:[%s5343_s1 + $0x38] sm:$0xff]  ;;  %vm1950_vm7 = vcmask 588800   ;;  %vm1962_vm8 = vcmask 7168  }
   0x3   :  { %v1988_v4 = vpack.c.bf16 %v26_v1, %v22_v0  ;;  %v30_v6 = vld [vmem:[%s5343_s1 + $0x48] sm:$0xff]  ;;  %v1990_v8 = vpack.c.bf16 %v25_v5, %v21_v2  ;;  %v29_v10 = vld [vmem:[%s5343_s1 + $0x40] sm:$0xff]  ;;  %v2010_v26 = vpack.c.bf16 %v28_v23, %v24_v22  ;;  %v23_v27 = vld [vmem:[%s5343_s1 + $0x10] sm:$0xff] }
   0x4   :  { %v34_v7 = vld [vmem:[%s5343_s1 + $0x68] sm:$0xff]  ;;  %v33_v11 = vld [vmem:[%s5343_s1 + $0x60] sm:$0xff]  ;;  %v27_v28 = vld [vmem:[%s5343_s1 + $0x30] sm:$0xff] }
   0x5   :  { %v1992_v9 = vpack.c.bf16 %v34_v7, %v30_v6  ;;  %v38_v12 = vld [vmem:[%s5343_s1 + $0x88] sm:$0xff]  ;;  %1989 = vmatprep.subr.bf16.mxu0 %v1988_v4  ;;  %v1994_v14 = vpack.c.bf16 %v33_v11, %v29_v10  ;;  %v37_v16 = vld [vmem:[%s5343_s1 + $0x80] sm:$0xff]  ;;  %v32_v29 = vld [vmem:[%s5343_s1 + $0x58] sm:$0xff]  ;;  %v2012_v31 = vpack.c.bf16 %v27_v28, %v23_v27  ;;  %2011 = vmatprep.subr.bf16.mxu1 %v2010_v26 }
   0x6   :  { %v42_v13 = vld [vmem:[%s5343_s1 + $0xa8] sm:$0xff]  ;;  %1991 = vmatpush1.bf16.msra.mxu0 %v1990_v8  ;;  %v41_v17 = vld [vmem:[%s5343_s1 + $0xa0] sm:$0xff]  ;;  %v36_v32 = vld [vmem:[%s5343_s1 + $0x78] sm:$0xff] }
   0x7   :  { %1993 = vmatprep.subr.bf16.mxu0 %v1992_v9  ;;  %v1996_v15 = vpack.c.bf16 %v42_v13, %v38_v12  ;;  %v46_v18 = vld [vmem:[%s5343_s1 + $0xc8] sm:$0xff]  ;;  %v45_v20 = vld [vmem:[%s5343_s1 + $0xc0] sm:$0xff]  ;;  %v1998_v24 = vpack.c.bf16 %v41_v17, %v37_v16  ;;  %v31_v33 = vld [vmem:[%s5343_s1 + $0x50] sm:$0xff]  ;;  %v2014_v36 = vpack.c.bf16 %v36_v32, %v32_v29  ;;  %2013 = vmatpush1.bf16.msra.mxu1 %v2012_v31 }
   0x8   :  { %v50_v19 = vld [vmem:[%s5343_s1 + $0xe8] sm:$0xff]  ;;  %v49_v21 = vld [vmem:[%s5343_s1 + $0xe0] sm:$0xff]  ;;  %v35_v34 = vld [vmem:[%s5343_s1 + $0x70] sm:$0xff] }
   0x9   :  { %v54_v25 = vld [vmem:[%s5343_s1 + $0x108] sm:$0xff]  ;;  %v2000_v30 = vpack.c.bf16 %v50_v19, %v46_v18  ;;  %v40_v37 = vld [vmem:[%s5343_s1 + $0x98] sm:$0xff]  ;;  %v2016_v39 = vpack.c.bf16 %v35_v34, %v31_v33  ;;  %v2002_v40 = vpack.c.bf16 %v49_v21, %v45_v20  ;;  %v53_v41 = vld [vmem:[%s5343_s1 + $0x100] sm:$0xff]  ;;  %2015 = vmatprep.subr.bf16.mxu1 %v2014_v36 }
   0xa   :  { %1995 = vmatpush1.bf16.msra.mxu0 %v1994_v14  ;;  %v58_v35 = vld [vmem:[%s5343_s1 + $0x128] sm:$0x3]  ;;  %v44_v38 = vld [vmem:[%s5343_s1 + $0xb8] sm:$0xff]  ;;  %v39_v43 = vld [vmem:[%s5343_s1 + $0x90] sm:$0xff] }
   0xb   :  { %1997 = vmatprep.subr.bf16.mxu0 %v1996_v15  ;;  %v2018_v42 = vpack.c.bf16 %v44_v38, %v40_v37  ;;  %v43_v44 = vld [vmem:[%s5343_s1 + $0xb0] sm:$0xff]  ;;  %v2004_v45 = vpack.c.bf16 %v58_v35, %v54_v25  ;;  %v57_v46 = vld [vmem:[%s5343_s1 + $0x120] sm:$0x3]  ;;  %v48_v47 = vld [vmem:[%s5343_s1 + $0xd8] sm:$0xff]  ;;  %2017 = vmatpush1.bf16.msra.mxu1 %v2016_v39 }
   0xc   :  { %v52_v48 = vld [vmem:[%s5343_s1 + $0xf8] sm:$0xff]  ;;  %vm2937_vm2 = vmpackc.low %vm87_vm0, %vm2803_vm1  ;;  %v247_v50 = vld [vmem:[%s5344_s2 + $0x28] sm:$0xff]  ;;  %v2020_v51 = vpack.c.bf16 %v43_v44, %v39_v43  ;;  %v2007_v53 = vpack.c.bf16 %v57_v46, %v53_v41 }
   0xd   :  { %v255_v52 = vld [vmem:[%s5344_s2 + $0x68] sm:$0xff]  ;;  %2019 = vmatprep.subr.bf16.mxu1 %v2018_v42  ;;  %v2022_v54 = vpack.c.bf16 %v52_v48, %v48_v47  ;;  %v47_v55 = vld [vmem:[%s5343_s1 + $0xd0] sm:$0xff]  ;;  %v56_v57 = vld [vmem:[%s5343_s1 + $0x118] sm:$0xff] }
   0xe   :  { %1999 = vmatpush1.bf16.msra.mxu0 %v1998_v24  ;;  %v51_v56 = vld [vmem:[%s5343_s1 + $0xf0] sm:$0xff]  ;;  %v60_v58 = vld [vmem:[%s5343_s1 + $0x138] sm:$0x3]  ;;  %v2280_v59 = vpack.c.bf16 %v255_v52, %v247_v50  ;;  %v246_v60 = vld [vmem:[%s5344_s2 + $0x20] sm:$0xff] }
   0xf   :  { %2001 = vmatprep.subr.bf16.mxu0 %v2000_v30  ;;  %v254_v61 = vld [vmem:[%s5344_s2 + $0x60] sm:$0xff]  ;;  %v263_v62 = vld [vmem:[%s5344_s2 + $0xa8] sm:$0xff]  ;;  %2021 = vmatpush1.bf16.msra.mxu1 %v2020_v51  ;;  %v2024_v1 = vpack.c.bf16 %v51_v56, %v47_v55  ;;  %v2026_v2 = vpack.c.bf16 %v60_v58, %v56_v57  ;;  %v55_v3 = vld [vmem:[%s5343_s1 + $0x110] sm:$0xff] }
  0x10   :  { %v271_v63 = vld [vmem:[%s5344_s2 + $0xe8] sm:$0xff]  ;;  %v20_v0 = vld [vmem:[%s5345_s0] sm:$0xff]  ;;  %2023 = vmatprep.subr.bf16.mxu1 %v2022_v54  ;;  %v59_v4 = vld [vmem:[%s5343_s1 + $0x130] sm:$0x3]  ;;  %v2282_v6 = vpack.c.bf16 %v254_v61, %v246_v60 }
  0x11   :  { %v243_v5 = vld [vmem:[%s5344_s2 + $0x8] sm:$0xff]  ;;  %v2284_v8 = vpack.c.bf16 %v271_v63, %v263_v62  ;;  %v262_v9 = vld [vmem:[%s5344_s2 + $0xa0] sm:$0xff]  ;;  %v2029_v13 = vpack.c.bf16 %v59_v4, %v55_v3 }
  0x12   :  { %2003 = vmatpush1.bf16.msra.mxu0 %v2002_v40  ;;  %v251_v7 = vld [vmem:[%s5344_s2 + $0x48] sm:$0xff]  ;;  %v270_v10 = vld [vmem:[%s5344_s2 + $0xe0] sm:$0xff] }
  0x13   :  { %2006 = vmatprep.subr.msk.bf16.mxu0 %vm2937_vm2, %v2004_v45  ;;  %v279_v11 = vld [vmem:[%s5344_s2 + $0x128] sm:$0xff]  ;;  %2025 = vmatpush1.bf16.msra.mxu1 %v2024_v1  ;;  %v2032_v14 = vpack.c.bf16 %v251_v7, %v243_v5  ;;  %v242_v15 = vld [vmem:[%s5344_s2] sm:$0xff]  ;;  %v2286_v18 = vpack.c.bf16 %v270_v10, %v262_v9 }
  0x14   :  { %v287_v12 = vld [vmem:[%s5344_s2 + $0x168] sm:$0xff]  ;;  %2028 = vmatprep.subr.msk.bf16.mxu1 %vm2937_vm2, %v2026_v2  ;;  %v250_v16 = vld [vmem:[%s5344_s2 + $0x40] sm:$0xff] }
  0x15   :  { %v259_v17 = vld [vmem:[%s5344_s2 + $0x88] sm:$0xff]  ;;  %v2288_v20 = vpack.c.bf16 %v287_v12, %v279_v11  ;;  %v278_v21 = vld [vmem:[%s5344_s2 + $0x120] sm:$0xff]  ;;  %v2034_v25 = vpack.c.bf16 %v250_v16, %v242_v15 }
  0x16   :  { %2009 = vmatpush1.bf16.msk.msra.mxu0 %vm2937_vm2, %v2007_v53  ;;  %v267_v19 = vld [vmem:[%s5344_s2 + $0xc8] sm:$0xff]  ;;  %v286_v22 = vld [vmem:[%s5344_s2 + $0x160] sm:$0xff] }
  0x17   :  { %2281 = vmatprep.subr.bf16.mxu0 %v2280_v59  ;;  %v295_v23 = vld [vmem:[%s5344_s2 + $0x1a8] sm:$0xff]  ;;  %2031 = vmatpush1.bf16.msk.msra.mxu1 %vm2937_vm2, %v2029_v13  ;;  %v2036_v26 = vpack.c.bf16 %v267_v19, %v259_v17  ;;  %v258_v27 = vld [vmem:[%s5344_s2 + $0x80] sm:$0xff]  ;;  %v2290_v30 = vpack.c.bf16 %v286_v22, %v278_v21 }
  0x18   :  { %v303_v24 = vld [vmem:[%s5344_s2 + $0x1e8] sm:$0xff]  ;;  %2033 = vmatprep.subr.bf16.mxu1 %v2032_v14  ;;  %v266_v28 = vld [vmem:[%s5344_s2 + $0xc0] sm:$0xff] }
  0x19   :  { %1970 = vmatmul.mubr.msk.f32.vlgmr.msra.gmra.mrb[0].mxu0 %vm83_vm3, %v20_v0  ;;  %v275_v29 = vld [vmem:[%s5344_s2 + $0x108] sm:$0xff]  ;;  %v2292_v32 = vpack.c.bf16 %v303_v24, %v295_v23  ;;  %v294_v33 = vld [vmem:[%s5344_s2 + $0x1a0] sm:$0xff]  ;;  %v2038_v37 = vpack.c.bf16 %v266_v28, %v258_v27 }
  0x1a   :  { %2283 = vmatpush1.bf16.msra.mxu0 %v2282_v6  ;;  %v283_v31 = vld [vmem:[%s5344_s2 + $0x148] sm:$0xff]  ;;  %v302_v34 = vld [vmem:[%s5344_s2 + $0x1e0] sm:$0xff]  ;;  %1973 = vmatmul.mubr.msk.f32.vlgmr.msra.gmra.mrb[0].mxu1 %vm83_vm3, %v20_v0 }
  0x1b   :  { %2285 = vmatprep.subr.bf16.mxu0 %v2284_v8  ;;  %v311_v35 = vld [vmem:[%s5344_s2 + $0x228] sm:$0xff]  ;;  %2035 = vmatpush1.bf16.msra.mxu1 %v2034_v25  ;;  %v2040_v38 = vpack.c.bf16 %v283_v31, %v275_v29  ;;  %v274_v39 = vld [vmem:[%s5344_s2 + $0x100] sm:$0xff]  ;;  %v2294_v42 = vpack.c.bf16 %v302_v34, %v294_v33 }
  0x1c   :  { %v319_v36 = vld [vmem:[%s5344_s2 + $0x268] sm:$0xff]  ;;  %2037 = vmatprep.subr.bf16.mxu1 %v2036_v26  ;;  %v282_v40 = vld [vmem:[%s5344_s2 + $0x140] sm:$0xff] }
  0x1d   :  { %v291_v41 = vld [vmem:[%s5344_s2 + $0x188] sm:$0xff]  ;;  %v2296_v44 = vpack.c.bf16 %v319_v36, %v311_v35  ;;  %v310_v45 = vld [vmem:[%s5344_s2 + $0x220] sm:$0xff]  ;;  %v2042_v49 = vpack.c.bf16 %v282_v40, %v274_v39 }
  0x1e   :  { %2287 = vmatpush1.bf16.msra.mxu0 %v2286_v18  ;;  %v299_v43 = vld [vmem:[%s5344_s2 + $0x1c8] sm:$0xff]  ;;  %v318_v46 = vld [vmem:[%s5344_s2 + $0x260] sm:$0xff] }
  0x1f   :  { %2289 = vmatprep.subr.bf16.mxu0 %v2288_v20  ;;  %v327_v47 = vld [vmem:[%s5344_s2 + $0x2a8] sm:$0xff]  ;;  %2039 = vmatpush1.bf16.msra.mxu1 %v2038_v37  ;;  %v2044_v50 = vpack.c.bf16 %v299_v43, %v291_v41  ;;  %v290_v51 = vld [vmem:[%s5344_s2 + $0x180] sm:$0xff]  ;;  %v2298_v54 = vpack.c.bf16 %v318_v46, %v310_v45 }
  0x20   :  { %v335_v48 = vld [vmem:[%s5344_s2 + $0x2e8] sm:$0xff]  ;;  %2041 = vmatprep.subr.bf16.mxu1 %v2040_v38  ;;  %v298_v52 = vld [vmem:[%s5344_s2 + $0x1c0] sm:$0xff] }
  0x21   :  { %v307_v53 = vld [vmem:[%s5344_s2 + $0x208] sm:$0xff]  ;;  %v2300_v56 = vpack.c.bf16 %v335_v48, %v327_v47  ;;  %v326_v57 = vld [vmem:[%s5344_s2 + $0x2a0] sm:$0xff]  ;;  %v2046_v61 = vpack.c.bf16 %v298_v52, %v290_v51 }
  0x22   :  { %2291 = vmatpush1.bf16.msra.mxu0 %v2290_v30  ;;  %v315_v55 = vld [vmem:[%s5344_s2 + $0x248] sm:$0xff]  ;;  %v334_v58 = vld [vmem:[%s5344_s2 + $0x2e0] sm:$0xff] }
  0x23   :  { %2293 = vmatprep.subr.bf16.mxu0 %v2292_v32  ;;  %v343_v59 = vld [vmem:[%s5344_s2 + $0x328] sm:$0xff]  ;;  %2043 = vmatpush1.bf16.msra.mxu1 %v2042_v49  ;;  %v2048_v62 = vpack.c.bf16 %v315_v55, %v307_v53  ;;  %v306_v63 = vld [vmem:[%s5344_s2 + $0x200] sm:$0xff]  ;;  %v2302_v2 = vpack.c.bf16 %v334_v58, %v326_v57 }
  0x24   :  { %v351_v60 = vld [vmem:[%s5344_s2 + $0x368] sm:$0xff]  ;;  %2045 = vmatprep.subr.bf16.mxu1 %v2044_v50  ;;  %v314_v0 = vld [vmem:[%s5344_s2 + $0x240] sm:$0xff] }
  0x25   :  { %v323_v1 = vld [vmem:[%s5344_s2 + $0x288] sm:$0xff]  ;;  %v2304_v4 = vpack.c.bf16 %v351_v60, %v343_v59  ;;  %v342_v5 = vld [vmem:[%s5344_s2 + $0x320] sm:$0xff]  ;;  %v2050_v9 = vpack.c.bf16 %v314_v0, %v306_v63 }
  0x26   :  { %2295 = vmatpush1.bf16.msra.mxu0 %v2294_v42  ;;  %v331_v3 = vld [vmem:[%s5344_s2 + $0x2c8] sm:$0xff]  ;;  %v350_v6 = vld [vmem:[%s5344_s2 + $0x360] sm:$0xff] }
  0x27   :  { %2297 = vmatprep.subr.bf16.mxu0 %v2296_v44  ;;  %v359_v7 = vld [vmem:[%s5344_s2 + $0x3a8] sm:$0xff]  ;;  %2047 = vmatpush1.bf16.msra.mxu1 %v2046_v61  ;;  %v2052_v10 = vpack.c.bf16 %v331_v3, %v323_v1  ;;  %v322_v11 = vld [vmem:[%s5344_s2 + $0x280] sm:$0xff]  ;;  %v2306_v14 = vpack.c.bf16 %v350_v6, %v342_v5 }
  0x28   :  { %v367_v8 = vld [vmem:[%s5344_s2 + $0x3e8] sm:$0xff]  ;;  %2049 = vmatprep.subr.bf16.mxu1 %v2048_v62  ;;  %v330_v12 = vld [vmem:[%s5344_s2 + $0x2c0] sm:$0xff] }
  0x29   :  { %v339_v13 = vld [vmem:[%s5344_s2 + $0x308] sm:$0xff]  ;;  %v2308_v16 = vpack.c.bf16 %v367_v8, %v359_v7  ;;  %v358_v17 = vld [vmem:[%s5344_s2 + $0x3a0] sm:$0xff]  ;;  %v2054_v21 = vpack.c.bf16 %v330_v12, %v322_v11 }
  0x2a   :  { %2299 = vmatpush1.bf16.msra.mxu0 %v2298_v54  ;;  %v347_v15 = vld [vmem:[%s5344_s2 + $0x348] sm:$0xff]  ;;  %v366_v18 = vld [vmem:[%s5344_s2 + $0x3e0] sm:$0xff] }
  0x2b   :  { %2301 = vmatprep.subr.bf16.mxu0 %v2300_v56  ;;  %v375_v19 = vld [vmem:[%s5344_s2 + $0x428] sm:$0xff]  ;;  %2051 = vmatpush1.bf16.msra.mxu1 %v2050_v9  ;;  %v2056_v22 = vpack.c.bf16 %v347_v15, %v339_v13  ;;  %v338_v23 = vld [vmem:[%s5344_s2 + $0x300] sm:$0xff]  ;;  %v2310_v26 = vpack.c.bf16 %v366_v18, %v358_v17 }
  0x2c   :  { %v383_v20 = vld [vmem:[%s5344_s2 + $0x468] sm:$0xff]  ;;  %2053 = vmatprep.subr.bf16.mxu1 %v2052_v10  ;;  %v346_v24 = vld [vmem:[%s5344_s2 + $0x340] sm:$0xff] }
  0x2d   :  { %v355_v25 = vld [vmem:[%s5344_s2 + $0x388] sm:$0xff]  ;;  %v2312_v28 = vpack.c.bf16 %v383_v20, %v375_v19  ;;  %v374_v29 = vld [vmem:[%s5344_s2 + $0x420] sm:$0xff]  ;;  %v2058_v33 = vpack.c.bf16 %v346_v24, %v338_v23 }
  0x2e   :  { %2303 = vmatpush1.bf16.msra.mxu0 %v2302_v2  ;;  %v363_v27 = vld [vmem:[%s5344_s2 + $0x3c8] sm:$0xff]  ;;  %v382_v30 = vld [vmem:[%s5344_s2 + $0x460] sm:$0xff] }
  0x2f   :  { %2305 = vmatprep.subr.bf16.mxu0 %v2304_v4  ;;  %v391_v31 = vld [vmem:[%s5344_s2 + $0x4a8] sm:$0xff]  ;;  %2055 = vmatpush1.bf16.msra.mxu1 %v2054_v21  ;;  %v2060_v34 = vpack.c.bf16 %v363_v27, %v355_v25  ;;  %v354_v35 = vld [vmem:[%s5344_s2 + $0x380] sm:$0xff]  ;;  %v2314_v38 = vpack.c.bf16 %v382_v30, %v374_v29 }
  0x30   :  { %v399_v32 = vld [vmem:[%s5344_s2 + $0x4e8] sm:$0xff]  ;;  %2057 = vmatprep.subr.bf16.mxu1 %v2056_v22  ;;  %v362_v36 = vld [vmem:[%s5344_s2 + $0x3c0] sm:$0xff] }
  0x31   :  { %v371_v37 = vld [vmem:[%s5344_s2 + $0x408] sm:$0xff]  ;;  %v2316_v40 = vpack.c.bf16 %v399_v32, %v391_v31  ;;  %v390_v41 = vld [vmem:[%s5344_s2 + $0x4a0] sm:$0xff]  ;;  %v2062_v45 = vpack.c.bf16 %v362_v36, %v354_v35 }
  0x32   :  { %2307 = vmatpush1.bf16.msra.mxu0 %v2306_v14  ;;  %v379_v39 = vld [vmem:[%s5344_s2 + $0x448] sm:$0xff]  ;;  %v398_v42 = vld [vmem:[%s5344_s2 + $0x4e0] sm:$0xff] }
  0x33   :  { %2309 = vmatprep.subr.bf16.mxu0 %v2308_v16  ;;  %v407_v43 = vld [vmem:[%s5344_s2 + $0x528] sm:$0xff]  ;;  %2059 = vmatpush1.bf16.msra.mxu1 %v2058_v33  ;;  %v2064_v46 = vpack.c.bf16 %v379_v39, %v371_v37  ;;  %v370_v47 = vld [vmem:[%s5344_s2 + $0x400] sm:$0xff]  ;;  %v2318_v50 = vpack.c.bf16 %v398_v42, %v390_v41 }
  0x34   :  { %v415_v44 = vld [vmem:[%s5344_s2 + $0x568] sm:$0xff]  ;;  %2061 = vmatprep.subr.bf16.mxu1 %v2060_v34  ;;  %v378_v48 = vld [vmem:[%s5344_s2 + $0x440] sm:$0xff] }
  0x35   :  { %v387_v49 = vld [vmem:[%s5344_s2 + $0x488] sm:$0xff]  ;;  %v2320_v52 = vpack.c.bf16 %v415_v44, %v407_v43  ;;  %v406_v53 = vld [vmem:[%s5344_s2 + $0x520] sm:$0xff]  ;;  %v2066_v57 = vpack.c.bf16 %v378_v48, %v370_v47 }
  0x36   :  { %2311 = vmatpush1.bf16.msra.mxu0 %v2310_v26  ;;  %v395_v51 = vld [vmem:[%s5344_s2 + $0x4c8] sm:$0xff]  ;;  %v414_v54 = vld [vmem:[%s5344_s2 + $0x560] sm:$0xff] }
  0x37   :  { %2313 = vmatprep.subr.bf16.mxu0 %v2312_v28  ;;  %v423_v55 = vld [vmem:[%s5344_s2 + $0x5a8] sm:$0xff]  ;;  %2063 = vmatpush1.bf16.msra.mxu1 %v2062_v45  ;;  %v2068_v58 = vpack.c.bf16 %v395_v51, %v387_v49  ;;  %v386_v59 = vld [vmem:[%s5344_s2 + $0x480] sm:$0xff]  ;;  %v2322_v62 = vpack.c.bf16 %v414_v54, %v406_v53 }
  0x38   :  { %v431_v56 = vld [vmem:[%s5344_s2 + $0x5e8] sm:$0xff]  ;;  %2065 = vmatprep.subr.bf16.mxu1 %v2064_v46  ;;  %v394_v60 = vld [vmem:[%s5344_s2 + $0x4c0] sm:$0xff] }
  0x39   :  { %v403_v61 = vld [vmem:[%s5344_s2 + $0x508] sm:$0xff]  ;;  %v2324_v0 = vpack.c.bf16 %v431_v56, %v423_v55  ;;  %v422_v1 = vld [vmem:[%s5344_s2 + $0x5a0] sm:$0xff]  ;;  %v2070_v5 = vpack.c.bf16 %v394_v60, %v386_v59 }
  0x3a   :  { %2315 = vmatpush1.bf16.msra.mxu0 %v2314_v38  ;;  %v411_v63 = vld [vmem:[%s5344_s2 + $0x548] sm:$0xff]  ;;  %v430_v2 = vld [vmem:[%s5344_s2 + $0x5e0] sm:$0xff] }
  0x3b   :  { %2317 = vmatprep.subr.bf16.mxu0 %v2316_v40  ;;  %v439_v3 = vld [vmem:[%s5344_s2 + $0x628] sm:$0xff]  ;;  %2067 = vmatpush1.bf16.msra.mxu1 %v2066_v57  ;;  %v2072_v6 = vpack.c.bf16 %v411_v63, %v403_v61  ;;  %v402_v7 = vld [vmem:[%s5344_s2 + $0x500] sm:$0xff]  ;;  %v2326_v10 = vpack.c.bf16 %v430_v2, %v422_v1 }
  0x3c   :  { %v447_v4 = vld [vmem:[%s5344_s2 + $0x668] sm:$0xff]  ;;  %2069 = vmatprep.subr.bf16.mxu1 %v2068_v58  ;;  %v410_v8 = vld [vmem:[%s5344_s2 + $0x540] sm:$0xff] }
  0x3d   :  { %v419_v9 = vld [vmem:[%s5344_s2 + $0x588] sm:$0xff]  ;;  %v2328_v12 = vpack.c.bf16 %v447_v4, %v439_v3  ;;  %v438_v13 = vld [vmem:[%s5344_s2 + $0x620] sm:$0xff]  ;;  %v2074_v17 = vpack.c.bf16 %v410_v8, %v402_v7 }
  0x3e   :  { %2319 = vmatpush1.bf16.msra.mxu0 %v2318_v50  ;;  %v427_v11 = vld [vmem:[%s5344_s2 + $0x5c8] sm:$0xff]  ;;  %v446_v14 = vld [vmem:[%s5344_s2 + $0x660] sm:$0xff] }
  0x3f   :  { %2321 = vmatprep.subr.bf16.mxu0 %v2320_v52  ;;  %v455_v15 = vld [vmem:[%s5344_s2 + $0x6a8] sm:$0xff]  ;;  %2071 = vmatpush1.bf16.msra.mxu1 %v2070_v5  ;;  %v2076_v18 = vpack.c.bf16 %v427_v11, %v419_v9  ;;  %v418_v19 = vld [vmem:[%s5344_s2 + $0x580] sm:$0xff]  ;;  %v2330_v22 = vpack.c.bf16 %v446_v14, %v438_v13  ;;  %v63_v5 = vlaneseq }
  0x40   :  { %v463_v16 = vld [vmem:[%s5344_s2 + $0x6e8] sm:$0xff]  ;;  %2073 = vmatprep.subr.bf16.mxu1 %v2072_v6  ;;  %v426_v20 = vld [vmem:[%s5344_s2 + $0x5c0] sm:$0xff] }
  0x41   :  { %v435_v21 = vld [vmem:[%s5344_s2 + $0x608] sm:$0xff]  ;;  %v2332_v24 = vpack.c.bf16 %v463_v16, %v455_v15  ;;  %v454_v25 = vld [vmem:[%s5344_s2 + $0x6a0] sm:$0xff]  ;;  %v2078_v29 = vpack.c.bf16 %v426_v20, %v418_v19  ;;  %v3368_v6 = vshrl.u32 %v63_v5, 7 }
  0x42   :  { %2323 = vmatpush1.bf16.msra.mxu0 %v2322_v62  ;;  %v443_v23 = vld [vmem:[%s5344_s2 + $0x648] sm:$0xff]  ;;  %v462_v26 = vld [vmem:[%s5344_s2 + $0x6e0] sm:$0xff] }
  0x43   :  { %2325 = vmatprep.subr.bf16.mxu0 %v2324_v0  ;;  %v471_v27 = vld [vmem:[%s5344_s2 + $0x728] sm:$0xff]  ;;  %2075 = vmatpush1.bf16.msra.mxu1 %v2074_v17  ;;  %v2080_v30 = vpack.c.bf16 %v443_v23, %v435_v21  ;;  %v434_v31 = vld [vmem:[%s5344_s2 + $0x600] sm:$0xff]  ;;  %v2334_v34 = vpack.c.bf16 %v462_v26, %v454_v25  ;;  %v3371_v7 = vsub.s32 1, %v3368_v6  ;;  %v3379_v9 = vsub.s32 0, %v3368_v6 }
  0x44   :  { %v479_v28 = vld [vmem:[%s5344_s2 + $0x768] sm:$0xff]  ;;  %2077 = vmatprep.subr.bf16.mxu1 %v2076_v18  ;;  %v442_v32 = vld [vmem:[%s5344_s2 + $0x640] sm:$0xff] }
  0x45   :  { %v451_v33 = vld [vmem:[%s5344_s2 + $0x688] sm:$0xff]  ;;  %v2336_v36 = vpack.c.bf16 %v479_v28, %v471_v27  ;;  %v470_v37 = vld [vmem:[%s5344_s2 + $0x720] sm:$0xff]  ;;  %v2082_v39 = vpack.c.bf16 %v442_v32, %v434_v31 }
  0x46   :  { %2327 = vmatpush1.bf16.msra.mxu0 %v2326_v10  ;;  %v459_v35 = vld [vmem:[%s5344_s2 + $0x6c8] sm:$0xff]  ;;  %v478_v38 = vld [vmem:[%s5344_s2 + $0x760] sm:$0xff] }
  0x47   :  { %2329 = vmatprep.subr.bf16.mxu0 %v2328_v12  ;;  %2079 = vmatpush1.bf16.msra.mxu1 %v2078_v29  ;;  %v2084_v40 = vpack.c.bf16 %v459_v35, %v451_v33  ;;  %v450_v41 = vld [vmem:[%s5344_s2 + $0x680] sm:$0xff]  ;;  %v2338_v43 = vpack.c.bf16 %v478_v38, %v470_v37  ;;  %v467_v44 = vld [vmem:[%s5344_s2 + $0x708] sm:$0xff] }
  0x48   :  { %2081 = vmatprep.subr.bf16.mxu1 %v2080_v30  ;;  %v458_v42 = vld [vmem:[%s5344_s2 + $0x6c0] sm:$0xff]  ;;  %v475_v45 = vld [vmem:[%s5344_s2 + $0x748] sm:$0xff] }
  0x49   :  { %v2086_v46 = vpack.c.bf16 %v458_v42, %v450_v41  ;;  %v2088_v47 = vpack.c.bf16 %v475_v45, %v467_v44  ;;  %v466_v48 = vld [vmem:[%s5344_s2 + $0x700] sm:$0xff]  ;;  %v483_v51 = vld [vmem:[%s5344_s2 + $0x788] sm:$0xff] }
  0x4a   :  { %2331 = vmatpush1.bf16.msra.mxu0 %v2330_v22  ;;  %v474_v49 = vld [vmem:[%s5344_s2 + $0x740] sm:$0xff]  ;;  %v491_v52 = vld [vmem:[%s5344_s2 + $0x7c8] sm:$0xff]  ;;  %v77_v22 = vsub.s32 3, %v3368_v6 }
  0x4b   :  { %2333 = vmatprep.subr.bf16.mxu0 %v2332_v24  ;;  %2083 = vmatpush1.bf16.msra.mxu1 %v2082_v39  ;;  %v2090_v50 = vpack.c.bf16 %v474_v49, %v466_v48  ;;  %v487_v53 = vld [vmem:[%s5344_s2 + $0x7a8] sm:$0xff]  ;;  %v2092_v54 = vpack.c.bf16 %v491_v52, %v483_v51  ;;  %v482_v56 = vld [vmem:[%s5344_s2 + $0x780] sm:$0xff] }
  0x4c   :  { %2085 = vmatprep.subr.bf16.mxu1 %v2084_v40  ;;  %v495_v55 = vld [vmem:[%s5344_s2 + $0x7e8] sm:$0xff]  ;;  %v490_v57 = vld [vmem:[%s5344_s2 + $0x7c0] sm:$0xff] }
  0x4d   :  { %v2340_v58 = vpack.c.bf16 %v495_v55, %v487_v53  ;;  %v2094_v59 = vpack.c.bf16 %v490_v57, %v482_v56  ;;  %v486_v60 = vld [vmem:[%s5344_s2 + $0x7a0] sm:$0xff]  ;;  %v499_v63 = vld [vmem:[%s5344_s2 + $0x808] sm:$0xff] }
  0x4e   :  { %2335 = vmatpush1.bf16.msra.mxu0 %v2334_v34  ;;  %v494_v61 = vld [vmem:[%s5344_s2 + $0x7e0] sm:$0xff]  ;;  %v507_v0 = vld [vmem:[%s5344_s2 + $0x848] sm:$0xff] }
  0x4f   :  { %2337 = vmatprep.subr.bf16.mxu0 %v2336_v36  ;;  %2087 = vmatpush1.bf16.msra.mxu1 %v2086_v46  ;;  %v2342_v62 = vpack.c.bf16 %v494_v61, %v486_v60  ;;  %v503_v1 = vld [vmem:[%s5344_s2 + $0x828] sm:$0xff]  ;;  %v2096_v2 = vpack.c.bf16 %v507_v0, %v499_v63  ;;  %v3376_v8 = vld [vmem:[%s5346_s4] sm:$0xf] }
  0x50   :  { %2089 = vmatprep.subr.bf16.mxu1 %v2088_v47  ;;  %v511_v3 = vld [vmem:[%s5344_s2 + $0x868] sm:$0xff]  ;;  %v70_v10 = vrot.slane %v3376_v8, %v3371_v7  ;;  %v498_v11 = vld [vmem:[%s5344_s2 + $0x800] sm:$0xff]  ;;  %v66_v13 = vrot.slane %v3376_v8, %v3379_v9  ;;  %v78_v37 = vrot.slane %v3376_v8, %v77_v22 }
  0x51   :  { %v2344_v4 = vpack.c.bf16 %v511_v3, %v503_v1  ;;  %v506_v12 = vld [vmem:[%s5344_s2 + $0x840] sm:$0xff]  ;;  %v515_v16 = vld [vmem:[%s5344_s2 + $0x888] sm:$0xff] }
  0x52   :  { %2339 = vmatpush1.bf16.msra.mxu0 %v2338_v43  ;;  %v502_v14 = vld [vmem:[%s5344_s2 + $0x820] sm:$0xff]  ;;  %v523_v18 = vld [vmem:[%s5344_s2 + $0x8c8] sm:$0xff]  ;;  %v2098_v24 = vpack.c.bf16 %v506_v12, %v498_v11 }
  0x53   :  { %2091 = vmatpush1.bf16.msra.mxu1 %v2090_v50  ;;  %2341 = vmatprep.subr.bf16.mxu0 %v2340_v58  ;;  %v510_v15 = vld [vmem:[%s5344_s2 + $0x860] sm:$0xff]  ;;  %v519_v19 = vld [vmem:[%s5344_s2 + $0x8a8] sm:$0xff]  ;;  %v2100_v29 = vpack.c.bf16 %v523_v18, %v515_v16 }
  0x54   :  { %2093 = vmatprep.subr.bf16.mxu1 %v2092_v54  ;;  %v527_v20 = vld [vmem:[%s5344_s2 + $0x8e8] sm:$0xff]  ;;  %v2346_v25 = vpack.c.bf16 %v510_v15, %v502_v14  ;;  %v514_v26 = vld [vmem:[%s5344_s2 + $0x880] sm:$0xff] }
  0x55   :  { %v522_v27 = vld [vmem:[%s5344_s2 + $0x8c0] sm:$0xff]  ;;  %v2348_v30 = vpack.c.bf16 %v527_v20, %v519_v19  ;;  %v531_v33 = vld [vmem:[%s5344_s2 + $0x908] sm:$0xff] }
  0x56   :  { %2343 = vmatpush1.bf16.msra.mxu0 %v2342_v62  ;;  %v518_v31 = vld [vmem:[%s5344_s2 + $0x8a0] sm:$0xff]  ;;  %v539_v34 = vld [vmem:[%s5344_s2 + $0x948] sm:$0xff]  ;;  %v2102_v38 = vpack.c.bf16 %v522_v27, %v514_v26 }
  0x57   :  { %2095 = vmatpush1.bf16.msra.mxu1 %v2094_v59  ;;  %2345 = vmatprep.subr.bf16.mxu0 %v2344_v4  ;;  %v526_v32 = vld [vmem:[%s5344_s2 + $0x8e0] sm:$0xff]  ;;  %v535_v35 = vld [vmem:[%s5344_s2 + $0x928] sm:$0xff]  ;;  %v2104_v42 = vpack.c.bf16 %v539_v34, %v531_v33 }
  0x58   :  { %2097 = vmatprep.subr.bf16.mxu1 %v2096_v2  ;;  %v543_v36 = vld [vmem:[%s5344_s2 + $0x968] sm:$0xff]  ;;  %v2350_v39 = vpack.c.bf16 %v526_v32, %v518_v31  ;;  %v530_v40 = vld [vmem:[%s5344_s2 + $0x900] sm:$0xff] }
  0x59   :  { %v538_v41 = vld [vmem:[%s5344_s2 + $0x940] sm:$0xff]  ;;  %v2352_v43 = vpack.c.bf16 %v543_v36, %v535_v35  ;;  %v547_v46 = vld [vmem:[%s5344_s2 + $0x988] sm:$0xff] }
  0x5a   :  { %v534_v44 = vld [vmem:[%s5344_s2 + $0x920] sm:$0xff]  ;;  %v555_v48 = vld [vmem:[%s5344_s2 + $0x9c8] sm:$0xff]  ;;  %v2106_v53 = vpack.c.bf16 %v538_v41, %v530_v40 }
  0x5b   :  { %v542_v45 = vld [vmem:[%s5344_s2 + $0x960] sm:$0xff]  ;;  %v551_v49 = vld [vmem:[%s5344_s2 + $0x9a8] sm:$0xff]  ;;  %v2108_v57 = vpack.c.bf16 %v555_v48, %v547_v46 }
  0x5c   :  { %v559_v50 = vld [vmem:[%s5344_s2 + $0x9e8] sm:$0xff]  ;;  %v2354_v54 = vpack.c.bf16 %v542_v45, %v534_v44  ;;  %v546_v55 = vld [vmem:[%s5344_s2 + $0x980] sm:$0xff] }
  0x5d   :  { %v554_v56 = vld [vmem:[%s5344_s2 + $0x9c0] sm:$0xff]  ;;  %v2356_v58 = vpack.c.bf16 %v559_v50, %v551_v49  ;;  %v563_v61 = vld [vmem:[%s5344_s2 + $0xa08] sm:$0xff] }
  0x5e   :  { %v550_v59 = vld [vmem:[%s5344_s2 + $0x9a0] sm:$0xff]  ;;  %v571_v62 = vld [vmem:[%s5344_s2 + $0xa48] sm:$0xff]  ;;  %v2110_v1 = vpack.c.bf16 %v554_v56, %v546_v55 }
  0x5f   :  { %v558_v60 = vld [vmem:[%s5344_s2 + $0x9e0] sm:$0xff]  ;;  %v567_v63 = vld [vmem:[%s5344_s2 + $0xa28] sm:$0xff]  ;;  %v2112_v5 = vpack.c.bf16 %v571_v62, %v563_v61 }
  0x60   :  { %v575_v0 = vld [vmem:[%s5344_s2 + $0xa68] sm:$0xff]  ;;  %v2358_v2 = vpack.c.bf16 %v558_v60, %v550_v59  ;;  %v562_v3 = vld [vmem:[%s5344_s2 + $0xa00] sm:$0xff] }
  0x61   :  { %v570_v4 = vld [vmem:[%s5344_s2 + $0xa40] sm:$0xff]  ;;  %v587_v14 = vld [vmem:[%s5344_s2 + $0xac8] sm:$0xff] }
  0x62   :  { %v566_v11 = vld [vmem:[%s5344_s2 + $0xa20] sm:$0xff]  ;;  %v583_v15 = vld [vmem:[%s5344_s2 + $0xaa8] sm:$0xff] }
  0x63   :  { %v574_v12 = vld [vmem:[%s5344_s2 + $0xa60] sm:$0xff]  ;;  %v591_v16 = vld [vmem:[%s5344_s2 + $0xae8] sm:$0xff] }
  0x64   :  { %v2362_v18 = vpack.c.bf16 %v574_v12, %v566_v11  ;;  %v578_v19 = vld [vmem:[%s5344_s2 + $0xa80] sm:$0xff]  ;;  %v595_v27 = vld [vmem:[%s5344_s2 + $0xb08] sm:$0xff] }
  0x65   :  { %v586_v20 = vld [vmem:[%s5344_s2 + $0xac0] sm:$0xff]  ;;  %v607_v31 = vld [vmem:[%s5344_s2 + $0xb68] sm:$0xff] }
  0x66   :  { %v590_v26 = vld [vmem:[%s5344_s2 + $0xae0] sm:$0xff]  ;;  %v2118_v32 = vpack.c.bf16 %v586_v20, %v578_v19  ;;  %v611_v40 = vld [vmem:[%s5344_s2 + $0xb88] sm:$0xff] }
  0x67   :  { %v594_v34 = vld [vmem:[%s5344_s2 + $0xb00] sm:$0xff]  ;;  %v619_v41 = vld [vmem:[%s5344_s2 + $0xbc8] sm:$0xff] }
  0x68   :  { %v602_v35 = vld [vmem:[%s5344_s2 + $0xb40] sm:$0xff]  ;;  %v2124_v49 = vpack.c.bf16 %v619_v41, %v611_v40  ;;  %v635_v55 = vld [vmem:[%s5344_s2 + $0xc48] sm:$0xff] }
  0x69   :  { %v2122_v44 = vpack.c.bf16 %v602_v35, %v594_v34  ;;  %v610_v46 = vld [vmem:[%s5344_s2 + $0xb80] sm:$0xff]  ;;  %v631_v56 = vld [vmem:[%s5344_s2 + $0xc28] sm:$0xff] }
  0x6a   :  { %v618_v48 = vld [vmem:[%s5344_s2 + $0xbc0] sm:$0xff]  ;;  %v667_v19 = vld [vmem:[%s5344_s2 + $0xd48] sm:$0xff] }
  0x6b   :  { %v626_v60 = vld [vmem:[%s5344_s2 + $0xc00] sm:$0xff]  ;;  %v663_v20 = vld [vmem:[%s5344_s2 + $0xd28] sm:$0xff] }
  0x6c   :  { %v634_v61 = vld [vmem:[%s5344_s2 + $0xc40] sm:$0xff]  ;;  %v683_v34 = vld [vmem:[%s5344_s2 + $0xdc8] sm:$0xff] }
  0x6d   :  { %v642_v12 = vld [vmem:[%s5344_s2 + $0xc80] sm:$0xff]  ;;  %v679_v35 = vld [vmem:[%s5344_s2 + $0xda8] sm:$0xff] }
  0x6e   :  { %v682_v40 = vld [vmem:[%s5344_s2 + $0xdc0] sm:$0xff] }
  0xec   :  { %v166_v17 = vpop.f32.mrb[0].mxu0 }
  0xed   :  { %v168_v21 = vpop.f32.mrb[1].mxu0  ;;  %v3418_v28 = vadd.f32 %v166_v17, %v66_v13  ;;  %v3460_v47 = vpop.f32.mrb[0].mxu1  ;;  %v579_v13 = vld [vmem:[%s5344_s2 + $0xa88] sm:$0xff]  ;;  %v2114_v17 = vpack.c.bf16 %v570_v4, %v562_v3 }
  0xee   :  { %v3410_v23 = vadd.f32 %v168_v21, %v70_v10  ;;  %v239_v51 = vpop.f32.mrb[1].mxu1  ;;  %v2360_v10 = vpack.c.bf16 %v575_v0, %v567_v63  ;;  %v2116_v21 = vpack.c.bf16 %v587_v14, %v579_v13  ;;  %v630_v0 = vld [vmem:[%s5344_s2 + $0xc20] sm:$0xff]  ;;  %v651_v3 = vld [vmem:[%s5344_s2 + $0xcc8] sm:$0xff] }
  0xef   :  { %v3471_v52 = vadd.f32 %v239_v51, %v78_v37  ;;  %v614_v51 = vld [vmem:[%s5344_s2 + $0xba0] sm:$0xff]  ;;  %v647_v4 = vld [vmem:[%s5344_s2 + $0xca8] sm:$0xff] }
  0xf0   :  { %881 = vmatprep.mubr.f32.mxu1 %v3410_v23  ;;  %1165 = vmatprep.mubr.f32.mxu0 %v3410_v23  ;;  %v650_v13 = vld [vmem:[%s5344_s2 + $0xcc0] sm:$0xff] }
  0xf1   :  { %882 = vmatmul.mubr.f32.vlgmr.msra.gmra.mrb[2].mxu1 %v3418_v28  ;;  %1166 = vmatmul.mubr.f32.vlgmr.msra.gmra.mrb[2].mxu0 %v3418_v28 }
  0xf2   :  { %2099 = vmatpush1.bf16.msra.mxu1 %v2098_v24  ;;  %2347 = vmatpush1.bf16.msra.mxu0 %v2346_v25  ;;  %v2364_v24 = vpack.c.bf16 %v591_v16, %v583_v15  ;;  %v582_v25 = vld [vmem:[%s5344_s2 + $0xaa0] sm:$0xff] }
  0xf3   :  { %2101 = vmatprep.subr.bf16.mxu1 %v2100_v29  ;;  %2349 = vmatprep.subr.bf16.mxu0 %v2348_v30  ;;  %v603_v29 = vld [vmem:[%s5344_s2 + $0xb48] sm:$0xff]  ;;  %v2366_v33 = vpack.c.bf16 %v590_v26, %v582_v25  ;;  %v646_v16 = vld [vmem:[%s5344_s2 + $0xca0] sm:$0xff] }
  0xf4   :  { %1976 = vmatprep.mubr.msk.f32.mxu1 %vm788_vm4, %v3471_v52  ;;  %1982 = vmatprep.mubr.msk.f32.mxu0 %vm788_vm4, %v3471_v52  ;;  %v599_v30 = vld [vmem:[%s5344_s2 + $0xb28] sm:$0xff]  ;;  %v2120_v36 = vpack.c.bf16 %v603_v29, %v595_v27  ;;  %v658_v26 = vld [vmem:[%s5344_s2 + $0xd00] sm:$0xff] }
  0xf5   :  { %v2368_v37 = vpack.c.bf16 %v607_v31, %v599_v30  ;;  %v666_v27 = vld [vmem:[%s5344_s2 + $0xd40] sm:$0xff] }
  0xf6   :  { %2103 = vmatpush1.bf16.msra.mxu1 %v2102_v38  ;;  %2351 = vmatpush1.bf16.msra.mxu0 %v2350_v39  ;;  %v598_v38 = vld [vmem:[%s5344_s2 + $0xb20] sm:$0xff] }
  0xf7   :  { %2105 = vmatprep.subr.bf16.mxu1 %v2104_v42  ;;  %2353 = vmatprep.subr.bf16.mxu0 %v2352_v43  ;;  %v606_v39 = vld [vmem:[%s5344_s2 + $0xb60] sm:$0xff]  ;;  %v615_v42 = vld [vmem:[%s5344_s2 + $0xba8] sm:$0xff] }
  0xf8   :  { %v623_v43 = vld [vmem:[%s5344_s2 + $0xbe8] sm:$0xff]  ;;  %v2370_v45 = vpack.c.bf16 %v606_v39, %v598_v38  ;;  %v662_v31 = vld [vmem:[%s5344_s2 + $0xd20] sm:$0xff] }
  0xf9   :  { %v2372_v50 = vpack.c.bf16 %v623_v43, %v615_v42  ;;  %v674_v39 = vld [vmem:[%s5344_s2 + $0xd80] sm:$0xff] }
  0xfa   :  { %2107 = vmatpush1.bf16.msra.mxu1 %v2106_v53  ;;  %2355 = vmatpush1.bf16.msra.mxu0 %v2354_v54  ;;  %v622_v53 = vld [vmem:[%s5344_s2 + $0xbe0] sm:$0xff]  ;;  %v627_v54 = vld [vmem:[%s5344_s2 + $0xc08] sm:$0xff] }
  0xfb   :  { %2109 = vmatprep.subr.bf16.mxu1 %v2108_v57  ;;  %2357 = vmatprep.subr.bf16.mxu0 %v2356_v58  ;;  %v639_v57 = vld [vmem:[%s5344_s2 + $0xc68] sm:$0xff]  ;;  %v2126_v58 = vpack.c.bf16 %v618_v48, %v610_v46  ;;  %v2374_v59 = vpack.c.bf16 %v622_v53, %v614_v51  ;;  %v2128_v62 = vpack.c.bf16 %v635_v55, %v627_v54  ;;  %v678_v43 = vld [vmem:[%s5344_s2 + $0xda0] sm:$0xff] }
  0xfc   :  { %v2376_v63 = vpack.c.bf16 %v639_v57, %v631_v56  ;;  %v699_v46 = vld [vmem:[%s5344_s2 + $0xe48] sm:$0xff]  ;;  %v690_v53 = vld [vmem:[%s5344_s2 + $0xe00] sm:$0xff] }
  0xfd   :  { %v695_v48 = vld [vmem:[%s5344_s2 + $0xe28] sm:$0xff]  ;;  %v698_v54 = vld [vmem:[%s5344_s2 + $0xe40] sm:$0xff] }
  0xfe   :  { %2111 = vmatpush1.bf16.msra.mxu1 %v2110_v1  ;;  %2359 = vmatpush1.bf16.msra.mxu0 %v2358_v2  ;;  %v638_v1 = vld [vmem:[%s5344_s2 + $0xc60] sm:$0xff]  ;;  %v643_v2 = vld [vmem:[%s5344_s2 + $0xc88] sm:$0xff] }
  0xff   :  { %2113 = vmatprep.subr.bf16.mxu1 %v2112_v5  ;;  %2361 = vmatprep.subr.bf16.mxu0 %v2360_v10  ;;  %v655_v5 = vld [vmem:[%s5344_s2 + $0xce8] sm:$0xff]  ;;  %v2130_v10 = vpack.c.bf16 %v634_v61, %v626_v60  ;;  %v2378_v11 = vpack.c.bf16 %v638_v1, %v630_v0  ;;  %v2132_v14 = vpack.c.bf16 %v651_v3, %v643_v2  ;;  %v694_v57 = vld [vmem:[%s5344_s2 + $0xe20] sm:$0xff] }
 0x100   :  { %v2380_v15 = vpack.c.bf16 %v655_v5, %v647_v4  ;;  %v715_v60 = vld [vmem:[%s5344_s2 + $0xec8] sm:$0xff]  ;;  %v706_v1 = vld [vmem:[%s5344_s2 + $0xe80] sm:$0xff] }
 0x101   :  { %v711_v61 = vld [vmem:[%s5344_s2 + $0xea8] sm:$0xff]  ;;  %v714_v2 = vld [vmem:[%s5344_s2 + $0xec0] sm:$0xff] }
 0x102   :  { %2115 = vmatpush1.bf16.msra.mxu1 %v2114_v17  ;;  %2363 = vmatpush1.bf16.msra.mxu0 %v2362_v18  ;;  %v654_v17 = vld [vmem:[%s5344_s2 + $0xce0] sm:$0xff]  ;;  %v659_v18 = vld [vmem:[%s5344_s2 + $0xd08] sm:$0xff] }
 0x103   :  { %2117 = vmatprep.subr.bf16.mxu1 %v2116_v21  ;;  %2365 = vmatprep.subr.bf16.mxu0 %v2364_v24  ;;  %v671_v21 = vld [vmem:[%s5344_s2 + $0xd68] sm:$0xff]  ;;  %v2134_v24 = vpack.c.bf16 %v650_v13, %v642_v12  ;;  %v2382_v25 = vpack.c.bf16 %v654_v17, %v646_v16  ;;  %v2136_v29 = vpack.c.bf16 %v667_v19, %v659_v18  ;;  %v710_v5 = vld [vmem:[%s5344_s2 + $0xea0] sm:$0xff] }
 0x104   :  { %v2384_v30 = vpack.c.bf16 %v671_v21, %v663_v20  ;;  %v731_v12 = vld [vmem:[%s5344_s2 + $0xf48] sm:$0xff]  ;;  %v722_v17 = vld [vmem:[%s5344_s2 + $0xf00] sm:$0xff]  ;;  %v73_v20 = vsub.s32 2, %v3368_v6 }
 0x105   :  { %v727_v13 = vld [vmem:[%s5344_s2 + $0xf28] sm:$0xff]  ;;  %v730_v21 = vld [vmem:[%s5344_s2 + $0xf40] sm:$0xff] }
 0x106   :  { %2119 = vmatpush1.bf16.msra.mxu1 %v2118_v32  ;;  %2367 = vmatpush1.bf16.msra.mxu0 %v2366_v33  ;;  %v670_v32 = vld [vmem:[%s5344_s2 + $0xd60] sm:$0xff]  ;;  %v675_v33 = vld [vmem:[%s5344_s2 + $0xd88] sm:$0xff] }
 0x107   :  { %2121 = vmatprep.subr.bf16.mxu1 %v2120_v36  ;;  %2369 = vmatprep.subr.bf16.mxu0 %v2368_v37  ;;  %v687_v36 = vld [vmem:[%s5344_s2 + $0xde8] sm:$0xff]  ;;  %v2138_v37 = vpack.c.bf16 %v666_v27, %v658_v26  ;;  %v2386_v38 = vpack.c.bf16 %v670_v32, %v662_v31  ;;  %v2140_v41 = vpack.c.bf16 %v683_v34, %v675_v33  ;;  %v245_v32 = vld [vmem:[%s5344_s2 + $0x18] sm:$0xff]  ;;  %v252_v34 = vld [vmem:[%s5344_s2 + $0x50] sm:$0xff] }
 0x108   :  { %v2388_v42 = vpack.c.bf16 %v687_v36, %v679_v35  ;;  %v2154_v26 = vpack.c.bf16 %v730_v21, %v722_v17  ;;  %v743_v31 = vld [vmem:[%s5344_s2 + $0xfa8] sm:$0xf]  ;;  %v253_v33 = vld [vmem:[%s5344_s2 + $0x58] sm:$0xff]  ;;  %v364_v21 = vld [vmem:[%s5344_s2 + $0x3d0] sm:$0xff] }
 0x109   :  { %v261_v35 = vld [vmem:[%s5344_s2 + $0x98] sm:$0xff] }
 0x10a   :  { %2123 = vmatpush1.bf16.msra.mxu1 %v2122_v44  ;;  %2371 = vmatpush1.bf16.msra.mxu0 %v2370_v45  ;;  %v686_v44 = vld [vmem:[%s5344_s2 + $0xde0] sm:$0xff]  ;;  %v691_v45 = vld [vmem:[%s5344_s2 + $0xe08] sm:$0xff]  ;;  %v269_v36 = vld [vmem:[%s5344_s2 + $0xd8] sm:$0xff] }
 0x10b   :  { %2125 = vmatprep.subr.bf16.mxu1 %v2124_v49  ;;  %2373 = vmatprep.subr.bf16.mxu0 %v2372_v50  ;;  %v703_v49 = vld [vmem:[%s5344_s2 + $0xe68] sm:$0xff]  ;;  %v2142_v50 = vpack.c.bf16 %v682_v40, %v674_v39  ;;  %v2390_v51 = vpack.c.bf16 %v686_v44, %v678_v43  ;;  %v2144_v55 = vpack.c.bf16 %v699_v46, %v691_v45  ;;  %v742_v39 = vld [vmem:[%s5344_s2 + $0xfa0] sm:$0xf]  ;;  %v268_v43 = vld [vmem:[%s5344_s2 + $0xd0] sm:$0xff] }
 0x10c   :  { %v2392_v56 = vpack.c.bf16 %v703_v49, %v695_v48  ;;  %v2156_v40 = vpack.c.bf16 %v253_v33, %v245_v32  ;;  %v277_v44 = vld [vmem:[%s5344_s2 + $0x118] sm:$0xff]  ;;  %v276_v49 = vld [vmem:[%s5344_s2 + $0x110] sm:$0xff] }
 0x10d   :  { %v285_v45 = vld [vmem:[%s5344_s2 + $0x158] sm:$0xff]  ;;  %v1387_v32 = vld [vmem:[%s5347_s3 + $0x10] sm:$0xff] }
 0x10e   :  { %2127 = vmatpush1.bf16.msra.mxu1 %v2126_v58  ;;  %2375 = vmatpush1.bf16.msra.mxu0 %v2374_v59  ;;  %v702_v58 = vld [vmem:[%s5344_s2 + $0xe60] sm:$0xff]  ;;  %v707_v59 = vld [vmem:[%s5344_s2 + $0xe88] sm:$0xff]  ;;  %v2164_v48 = vpack.c.bf16 %v285_v45, %v277_v44  ;;  %v365_v17 = vld [vmem:[%s5344_s2 + $0x3d8] sm:$0xff] }
 0x10f   :  { %2129 = vmatprep.subr.bf16.mxu1 %v2128_v62  ;;  %2377 = vmatprep.subr.bf16.mxu0 %v2376_v63  ;;  %v719_v62 = vld [vmem:[%s5344_s2 + $0xee8] sm:$0xff]  ;;  %v2146_v63 = vpack.c.bf16 %v698_v54, %v690_v53  ;;  %v2394_v0 = vpack.c.bf16 %v702_v58, %v694_v57  ;;  %v2148_v3 = vpack.c.bf16 %v715_v60, %v707_v59  ;;  %v301_v53 = vld [vmem:[%s5344_s2 + $0x1d8] sm:$0xff]  ;;  %v300_v57 = vld [vmem:[%s5344_s2 + $0x1d0] sm:$0xff] }
 0x110   :  { %v2396_v4 = vpack.c.bf16 %v719_v62, %v711_v61  ;;  %v309_v58 = vld [vmem:[%s5344_s2 + $0x218] sm:$0xff]  ;;  %v308_v62 = vld [vmem:[%s5344_s2 + $0x210] sm:$0xff] }
 0x111   :  { %v317_v59 = vld [vmem:[%s5344_s2 + $0x258] sm:$0xff] }
 0x112   :  { %2131 = vmatpush1.bf16.msra.mxu1 %v2130_v10  ;;  %2379 = vmatpush1.bf16.msra.mxu0 %v2378_v11  ;;  %v718_v10 = vld [vmem:[%s5344_s2 + $0xee0] sm:$0xff]  ;;  %v723_v11 = vld [vmem:[%s5344_s2 + $0xf08] sm:$0xff]  ;;  %v2172_v61 = vpack.c.bf16 %v317_v59, %v309_v58 }
 0x113   :  { %2133 = vmatprep.subr.bf16.mxu1 %v2132_v14  ;;  %2381 = vmatprep.subr.bf16.mxu0 %v2380_v15  ;;  %v735_v14 = vld [vmem:[%s5344_s2 + $0xf68] sm:$0xff]  ;;  %v2150_v15 = vpack.c.bf16 %v714_v2, %v706_v1  ;;  %v2398_v16 = vpack.c.bf16 %v718_v10, %v710_v5  ;;  %v2152_v18 = vpack.c.bf16 %v731_v12, %v723_v11  ;;  %v333_v1 = vld [vmem:[%s5344_s2 + $0x2d8] sm:$0xff]  ;;  %v332_v5 = vld [vmem:[%s5344_s2 + $0x2d0] sm:$0xff] }
 0x114   :  { %v2400_v19 = vpack.c.bf16 %v735_v14, %v727_v13  ;;  %v341_v10 = vld [vmem:[%s5344_s2 + $0x318] sm:$0xff]  ;;  %v340_v14 = vld [vmem:[%s5344_s2 + $0x310] sm:$0xff] }
 0x115   :  { %v349_v11 = vld [vmem:[%s5344_s2 + $0x358] sm:$0xff] }
 0x116   :  { %2135 = vmatpush1.bf16.msra.mxu1 %v2134_v24  ;;  %2383 = vmatpush1.bf16.msra.mxu0 %v2382_v25  ;;  %v726_v24 = vld [vmem:[%s5344_s2 + $0xf20] sm:$0xff]  ;;  %v2180_v13 = vpack.c.bf16 %v349_v11, %v341_v10 }
 0x117   :  { %2137 = vmatprep.subr.bf16.mxu1 %v2136_v29  ;;  %2385 = vmatprep.subr.bf16.mxu0 %v2384_v30  ;;  %v734_v25 = vld [vmem:[%s5344_s2 + $0xf60] sm:$0xff]  ;;  %v74_v29 = vrot.slane %v3376_v8, %v73_v20  ;;  %v739_v30 = vld [vmem:[%s5344_s2 + $0xf88] sm:$0xf]  ;;  %v244_v8 = vld [vmem:[%s5344_s2 + $0x10] sm:$0xff] }
 0x118   :  { %v2402_v27 = vpack.c.bf16 %v734_v25, %v726_v24  ;;  %v373_v25 = vld [vmem:[%s5344_s2 + $0x418] sm:$0xff] }
 0x11a   :  { %2139 = vmatpush1.bf16.msra.mxu1 %v2138_v37  ;;  %2387 = vmatpush1.bf16.msra.mxu0 %v2386_v38  ;;  %v3782_v37 = vadd.f32 %v3460_v47, %v74_v29  ;;  %v738_v38 = vld [vmem:[%s5344_s2 + $0xf80] sm:$0xf]  ;;  %v260_v47 = vld [vmem:[%s5344_s2 + $0x90] sm:$0xff]  ;;  %v381_v29 = vld [vmem:[%s5344_s2 + $0x458] sm:$0xff] }
 0x11b   :  { %2141 = vmatprep.subr.bf16.mxu1 %v2140_v41  ;;  %2389 = vmatprep.subr.bf16.mxu0 %v2388_v42  ;;  %v2158_v41 = vpack.c.bf16 %v252_v34, %v244_v8  ;;  %v2160_v42 = vpack.c.bf16 %v269_v36, %v261_v35  ;;  %v2162_v46 = vpack.c.bf16 %v268_v43, %v260_v47  ;;  %v372_v34 = vld [vmem:[%s5344_s2 + $0x410] sm:$0xff]  ;;  %v1389_v47 = vld [vmem:[%s5347_s3 + $0x20] sm:$0xff] }
 0x11c   :  { %v380_v35 = vld [vmem:[%s5344_s2 + $0x450] sm:$0xff]  ;;  %v2188_v36 = vpack.c.bf16 %v381_v29, %v373_v25 }
 0x11d   :  { %v1391_v43 = vld [vmem:[%s5347_s3 + $0x30] sm:$0xff]  ;;  %v2190_v45 = vpack.c.bf16 %v380_v35, %v372_v34  ;;  %v1405_v35 = vld [vmem:[%s5347_s3 + $0xa0] sm:$0xff] }
 0x11e   :  { %2143 = vmatpush1.bf16.msra.mxu1 %v2142_v50  ;;  %2391 = vmatpush1.bf16.msra.mxu0 %v2390_v51  ;;  %v284_v50 = vld [vmem:[%s5344_s2 + $0x150] sm:$0xff]  ;;  %v293_v51 = vld [vmem:[%s5344_s2 + $0x198] sm:$0xff]  ;;  %v2534_v44 = vpack.c.bf16 %v1391_v43, %v1389_v47  ;;  %v1410_v43 = vld [vmem:[%s5347_s3 + $0xc8] sm:$0xff] }
 0x11f   :  { %2145 = vmatprep.subr.bf16.mxu1 %v2144_v55  ;;  %2393 = vmatprep.subr.bf16.mxu0 %v2392_v56  ;;  %v2166_v54 = vpack.c.bf16 %v284_v50, %v276_v49  ;;  %v2168_v55 = vpack.c.bf16 %v301_v53, %v293_v51  ;;  %v292_v56 = vld [vmem:[%s5344_s2 + $0x190] sm:$0xff]  ;;  %v405_v50 = vld [vmem:[%s5344_s2 + $0x518] sm:$0xff]  ;;  %v1394_v51 = vld [vmem:[%s5347_s3 + $0x48] sm:$0xff] }
 0x120   :  { %v2170_v60 = vpack.c.bf16 %v300_v57, %v292_v56  ;;  %v1396_v53 = vld [vmem:[%s5347_s3 + $0x58] sm:$0xff]  ;;  %v1393_v56 = vld [vmem:[%s5347_s3 + $0x40] sm:$0xff]  ;;  %v1395_v57 = vld [vmem:[%s5347_s3 + $0x50] sm:$0xff] }
 0x121   :  { %v2538_v58 = vpack.c.bf16 %v1395_v57, %v1393_v56  ;;  %v444_v29 = vld [vmem:[%s5344_s2 + $0x650] sm:$0xff]  ;;  %v469_v47 = vld [vmem:[%s5344_s2 + $0x718] sm:$0xff]  ;;  %v1414_v57 = vld [vmem:[%s5347_s3 + $0xe8] sm:$0xff] }
 0x122   :  { %2147 = vmatpush1.bf16.msra.mxu1 %v2146_v63  ;;  %2395 = vmatpush1.bf16.msra.mxu0 %v2394_v0  ;;  %v316_v63 = vld [vmem:[%s5344_s2 + $0x250] sm:$0xff]  ;;  %v325_v0 = vld [vmem:[%s5344_s2 + $0x298] sm:$0xff] }
 0x123   :  { %2149 = vmatprep.subr.bf16.mxu1 %v2148_v3  ;;  %2397 = vmatprep.subr.bf16.mxu0 %v2396_v4  ;;  %v2174_v2 = vpack.c.bf16 %v316_v63, %v308_v62  ;;  %v2176_v3 = vpack.c.bf16 %v333_v1, %v325_v0  ;;  %v324_v4 = vld [vmem:[%s5344_s2 + $0x290] sm:$0xff]  ;;  %v421_v63 = vld [vmem:[%s5344_s2 + $0x598] sm:$0xff]  ;;  %v1398_v0 = vld [vmem:[%s5347_s3 + $0x68] sm:$0xff] }
 0x124   :  { %v2178_v12 = vpack.c.bf16 %v332_v5, %v324_v4  ;;  %v1400_v1 = vld [vmem:[%s5347_s3 + $0x78] sm:$0xff]  ;;  %v1397_v4 = vld [vmem:[%s5347_s3 + $0x60] sm:$0xff]  ;;  %v1399_v5 = vld [vmem:[%s5347_s3 + $0x70] sm:$0xff] }
 0x125   :  { %v2542_v10 = vpack.c.bf16 %v1399_v5, %v1397_v4  ;;  %v485_v56 = vld [vmem:[%s5344_s2 + $0x798] sm:$0xff]  ;;  %v1418_v5 = vld [vmem:[%s5347_s3 + $0x108] sm:$0xff] }
 0x126   :  { %2151 = vmatpush1.bf16.msra.mxu1 %v2150_v15  ;;  %2399 = vmatpush1.bf16.msra.mxu0 %v2398_v16  ;;  %v348_v15 = vld [vmem:[%s5344_s2 + $0x350] sm:$0xff]  ;;  %v357_v16 = vld [vmem:[%s5344_s2 + $0x398] sm:$0xff] }
 0x127   :  { %2153 = vmatprep.subr.bf16.mxu1 %v2152_v18  ;;  %2401 = vmatprep.subr.bf16.mxu0 %v2400_v19  ;;  %v2182_v18 = vpack.c.bf16 %v348_v15, %v340_v14  ;;  %v356_v19 = vld [vmem:[%s5344_s2 + $0x390] sm:$0xff]  ;;  %v2184_v24 = vpack.c.bf16 %v365_v17, %v357_v16  ;;  %v437_v15 = vld [vmem:[%s5344_s2 + $0x618] sm:$0xff]  ;;  %v1402_v16 = vld [vmem:[%s5347_s3 + $0x88] sm:$0xff] }
 0x128   :  { %v2186_v8 = vpack.c.bf16 %v364_v21, %v356_v19  ;;  %v1404_v17 = vld [vmem:[%s5347_s3 + $0x98] sm:$0xff]  ;;  %v1401_v21 = vld [vmem:[%s5347_s3 + $0x80] sm:$0xff] }
 0x129   :  { %v2544_v19 = vpack.c.bf16 %v1404_v17, %v1402_v16  ;;  %v501_v4 = vld [vmem:[%s5344_s2 + $0x818] sm:$0xff]  ;;  %v500_v17 = vld [vmem:[%s5344_s2 + $0x810] sm:$0xff] }
 0x12a   :  { %2155 = vmatpush1.bf16.msra.mxu1 %v2154_v26  ;;  %2403 = vmatpush1.bf16.msra.mxu0 %v2402_v27  ;;  %v1386_v26 = vld [vmem:[%s5347_s3 + $0x8] sm:$0xff]  ;;  %v1388_v27 = vld [vmem:[%s5347_s3 + $0x18] sm:$0xff] }
 0x12b   :  { %1974 = vmatprep.subr.msk.mxu1 %vm792_vm5, %v739_v30  ;;  %1980 = vmatprep.subr.msk.mxu0 %vm792_vm5, %v743_v31  ;;  %v2528_v30 = vpack.c.bf16 %v1388_v27, %v1386_v26  ;;  %v1385_v31 = vld [vmem:[%s5347_s3] sm:$0xff]  ;;  %v436_v27 = vld [vmem:[%s5344_s2 + $0x610] sm:$0xff] }
 0x12c   :  { %v2530_v33 = vpack.c.bf16 %v1387_v32, %v1385_v31  ;;  %v453_v31 = vld [vmem:[%s5344_s2 + $0x698] sm:$0xff]  ;;  %v1406_v32 = vld [vmem:[%s5347_s3 + $0xa8] sm:$0xff] }
 0x12e   :  { %1975 = vmatpush1.msk.msra.mxu1 %vm792_vm5, %v738_v38  ;;  %1981 = vmatpush1.msk.msra.mxu0 %vm792_vm5, %v742_v39  ;;  %v389_v38 = vld [vmem:[%s5344_s2 + $0x498] sm:$0xff]  ;;  %v1390_v39 = vld [vmem:[%s5347_s3 + $0x28] sm:$0xff] }
 0x12f   :  { %953 = vmatmul.mubr.f32.vlgmr.msra.gmra.mrb[2].mxu1 %v3782_v37  ;;  %2157 = vmatprep.subr.bf16.mxu1 %v2156_v40  ;;  %v1392_v40 = vld [vmem:[%s5347_s3 + $0x38] sm:$0xff] }
 0x130   :  { %1237 = vmatmul.mubr.f32.vlgmr.msra.gmra.mrb[2].mxu0 %v3782_v37  ;;  %2159 = vmatpush1.bf16.msra.mxu1 %v2158_v41  ;;  %v397_v41 = vld [vmem:[%s5344_s2 + $0x4d8] sm:$0xff] }
 0x131   :  { %1023 = vmatprep.mubr.f32.mxu1 %v3410_v23  ;;  %2161 = vmatprep.subr.bf16.mxu1 %v2160_v42  ;;  %v2532_v42 = vpack.c.bf16 %v1392_v40, %v1390_v39  ;;  %v2192_v49 = vpack.c.bf16 %v397_v41, %v389_v38  ;;  %v2206_v39 = vpack.c.bf16 %v444_v29, %v436_v27  ;;  %v452_v40 = vld [vmem:[%s5344_s2 + $0x690] sm:$0xff]  ;;  %v1421_v29 = vld [vmem:[%s5347_s3 + $0x120] sm:$0xff] }
 0x132   :  { %2529 = vmatprep.subr.bf16.mxu0 %v2528_v30  ;;  %v460_v41 = vld [vmem:[%s5344_s2 + $0x6d0] sm:$0xff] }
 0x133   :  { %2531 = vmatpush1.bf16.msra.mxu0 %v2530_v33  ;;  %v1408_v33 = vld [vmem:[%s5347_s3 + $0xb8] sm:$0xff] }
 0x134   :  { %2163 = vmatpush1.bf16.msra.mxu1 %v2162_v46  ;;  %v388_v46 = vld [vmem:[%s5344_s2 + $0x490] sm:$0xff]  ;;  %2533 = vmatprep.subr.bf16.mxu0 %v2532_v42  ;;  %v2548_v34 = vpack.c.bf16 %v1408_v33, %v1406_v32 }
 0x135   :  { %2165 = vmatprep.subr.bf16.mxu1 %v2164_v48  ;;  %v396_v48 = vld [vmem:[%s5344_s2 + $0x4d0] sm:$0xff] }
 0x136   :  { %v2194_v59 = vpack.c.bf16 %v396_v48, %v388_v46  ;;  %v1409_v48 = vld [vmem:[%s5347_s3 + $0xc0] sm:$0xff]  ;;  %v516_v33 = vld [vmem:[%s5344_s2 + $0x890] sm:$0xff] }
 0x137   :  { %2535 = vmatpush1.bf16.msra.mxu0 %v2534_v44  ;;  %v1412_v44 = vld [vmem:[%s5347_s3 + $0xd8] sm:$0xff] }
 0x138   :  { %2167 = vmatpush1.bf16.msra.mxu1 %v2166_v54  ;;  %v413_v54 = vld [vmem:[%s5344_s2 + $0x558] sm:$0xff]  ;;  %v2552_v46 = vpack.c.bf16 %v1412_v44, %v1410_v43  ;;  %v532_v44 = vld [vmem:[%s5344_s2 + $0x910] sm:$0xff] }
 0x139   :  { %2169 = vmatprep.subr.bf16.mxu1 %v2168_v55  ;;  %v2536_v55 = vpack.c.bf16 %v1396_v53, %v1394_v51  ;;  %v2196_v62 = vpack.c.bf16 %v413_v54, %v405_v50  ;;  %v2210_v51 = vpack.c.bf16 %v460_v41, %v452_v40  ;;  %v468_v53 = vld [vmem:[%s5344_s2 + $0x710] sm:$0xff]  ;;  %v1425_v41 = vld [vmem:[%s5347_s3 + $0x140] sm:$0xff] }
 0x13a   :  { %v476_v54 = vld [vmem:[%s5344_s2 + $0x750] sm:$0xff] }
 0x13b   :  { %2537 = vmatprep.subr.bf16.mxu0 %v2536_v55 }
 0x13c   :  { %2171 = vmatpush1.bf16.msra.mxu1 %v2170_v60  ;;  %v404_v60 = vld [vmem:[%s5344_s2 + $0x510] sm:$0xff]  ;;  %2539 = vmatpush1.bf16.msra.mxu0 %v2538_v58  ;;  %v1416_v58 = vld [vmem:[%s5347_s3 + $0xf8] sm:$0xff] }
 0x13d   :  { %2173 = vmatprep.subr.bf16.mxu1 %v2172_v61  ;;  %v412_v61 = vld [vmem:[%s5344_s2 + $0x550] sm:$0xff] }
 0x13e   :  { %v2198_v11 = vpack.c.bf16 %v412_v61, %v404_v60  ;;  %v2556_v60 = vpack.c.bf16 %v1416_v58, %v1414_v57  ;;  %v1413_v61 = vld [vmem:[%s5347_s3 + $0xe0] sm:$0xff]  ;;  %v548_v58 = vld [vmem:[%s5344_s2 + $0x990] sm:$0xff] }
 0x140   :  { %2175 = vmatpush1.bf16.msra.mxu1 %v2174_v2  ;;  %v429_v2 = vld [vmem:[%s5344_s2 + $0x5d8] sm:$0xff] }
 0x141   :  { %2177 = vmatprep.subr.bf16.mxu1 %v2176_v3  ;;  %v2540_v3 = vpack.c.bf16 %v1400_v1, %v1398_v0  ;;  %v2200_v14 = vpack.c.bf16 %v429_v2, %v421_v63  ;;  %v2214_v0 = vpack.c.bf16 %v476_v54, %v468_v53  ;;  %v484_v1 = vld [vmem:[%s5344_s2 + $0x790] sm:$0xff]  ;;  %v1429_v54 = vld [vmem:[%s5347_s3 + $0x160] sm:$0xff] }
 0x142   :  { %v492_v2 = vld [vmem:[%s5344_s2 + $0x7d0] sm:$0xff] }
 0x143   :  { %2541 = vmatprep.subr.bf16.mxu0 %v2540_v3  ;;  %v2218_v16 = vpack.c.bf16 %v492_v2, %v484_v1  ;;  %v1433_v2 = vld [vmem:[%s5347_s3 + $0x180] sm:$0xff] }
 0x144   :  { %2179 = vmatpush1.bf16.msra.mxu1 %v2178_v12  ;;  %v420_v12 = vld [vmem:[%s5344_s2 + $0x590] sm:$0xff]  ;;  %2543 = vmatpush1.bf16.msra.mxu0 %v2542_v10  ;;  %v1420_v10 = vld [vmem:[%s5347_s3 + $0x118] sm:$0xff] }
 0x145   :  { %2181 = vmatprep.subr.bf16.mxu1 %v2180_v13  ;;  %v428_v13 = vld [vmem:[%s5344_s2 + $0x5d0] sm:$0xff]  ;;  %2545 = vmatprep.subr.bf16.mxu0 %v2544_v19 }
 0x146   :  { %v2202_v26 = vpack.c.bf16 %v428_v13, %v420_v12  ;;  %v2560_v12 = vpack.c.bf16 %v1420_v10, %v1418_v5  ;;  %v1417_v13 = vld [vmem:[%s5347_s3 + $0x100] sm:$0xff]  ;;  %v564_v10 = vld [vmem:[%s5344_s2 + $0xa10] sm:$0xff] }
 0x148   :  { %2183 = vmatpush1.bf16.msra.mxu1 %v2182_v18  ;;  %v445_v18 = vld [vmem:[%s5344_s2 + $0x658] sm:$0xff] }
 0x149   :  { %2185 = vmatprep.subr.bf16.mxu1 %v2184_v24  ;;  %v1403_v24 = vld [vmem:[%s5347_s3 + $0x90] sm:$0xff]  ;;  %v2204_v30 = vpack.c.bf16 %v445_v18, %v437_v15 }
 0x14a   :  { %v2546_v25 = vpack.c.bf16 %v1403_v24, %v1401_v21  ;;  %v508_v18 = vld [vmem:[%s5344_s2 + $0x850] sm:$0xff]  ;;  %v517_v21 = vld [vmem:[%s5344_s2 + $0x898] sm:$0xff]  ;;  %v1422_v24 = vld [vmem:[%s5347_s3 + $0x128] sm:$0xff] }
 0x14b   :  { %v2222_v32 = vpack.c.bf16 %v508_v18, %v500_v17  ;;  %v1437_v18 = vld [vmem:[%s5347_s3 + $0x1a0] sm:$0xff] }
 0x14c   :  { %2187 = vmatpush1.bf16.msra.mxu1 %v2186_v8  ;;  %2547 = vmatpush1.bf16.msra.mxu0 %v2546_v25  ;;  %v461_v8 = vld [vmem:[%s5344_s2 + $0x6d8] sm:$0xff] }
 0x14d   :  { %2189 = vmatprep.subr.bf16.mxu1 %v2188_v36  ;;  %v1407_v36 = vld [vmem:[%s5347_s3 + $0xb0] sm:$0xff]  ;;  %2549 = vmatprep.subr.bf16.mxu0 %v2548_v34  ;;  %v2208_v42 = vpack.c.bf16 %v461_v8, %v453_v31  ;;  %v1424_v25 = vld [vmem:[%s5347_s3 + $0x138] sm:$0xff] }
 0x14e   :  { %v2550_v38 = vpack.c.bf16 %v1407_v36, %v1405_v35  ;;  %v2564_v27 = vpack.c.bf16 %v1424_v25, %v1422_v24  ;;  %v524_v8 = vld [vmem:[%s5344_s2 + $0x8d0] sm:$0xff]  ;;  %v533_v35 = vld [vmem:[%s5344_s2 + $0x918] sm:$0xff]  ;;  %v1426_v36 = vld [vmem:[%s5347_s3 + $0x148] sm:$0xff] }
 0x14f   :  { %v2226_v43 = vpack.c.bf16 %v524_v8, %v516_v33  ;;  %v580_v25 = vld [vmem:[%s5344_s2 + $0xa90] sm:$0xff]  ;;  %v1441_v8 = vld [vmem:[%s5347_s3 + $0x1c0] sm:$0xff] }
 0x150   :  { %2191 = vmatpush1.bf16.msra.mxu1 %v2190_v45  ;;  %2551 = vmatpush1.bf16.msra.mxu0 %v2550_v38  ;;  %v477_v45 = vld [vmem:[%s5344_s2 + $0x758] sm:$0xff] }
 0x151   :  { %2193 = vmatprep.subr.bf16.mxu1 %v2192_v49  ;;  %v1411_v49 = vld [vmem:[%s5347_s3 + $0xd0] sm:$0xff]  ;;  %2553 = vmatprep.subr.bf16.mxu0 %v2552_v46  ;;  %v2212_v55 = vpack.c.bf16 %v477_v45, %v469_v47  ;;  %v1428_v38 = vld [vmem:[%s5347_s3 + $0x158] sm:$0xff] }
 0x152   :  { %v2554_v50 = vpack.c.bf16 %v1411_v49, %v1409_v48  ;;  %v2568_v40 = vpack.c.bf16 %v1428_v38, %v1426_v36  ;;  %v540_v45 = vld [vmem:[%s5344_s2 + $0x950] sm:$0xff]  ;;  %v549_v48 = vld [vmem:[%s5344_s2 + $0x998] sm:$0xff]  ;;  %v1430_v49 = vld [vmem:[%s5347_s3 + $0x168] sm:$0xff] }
 0x153   :  { %v2230_v57 = vpack.c.bf16 %v540_v45, %v532_v44  ;;  %v596_v38 = vld [vmem:[%s5344_s2 + $0xb10] sm:$0xff]  ;;  %v1445_v45 = vld [vmem:[%s5347_s3 + $0x1e0] sm:$0xff] }
 0x154   :  { %2195 = vmatpush1.bf16.msra.mxu1 %v2194_v59  ;;  %2555 = vmatpush1.bf16.msra.mxu0 %v2554_v50  ;;  %v493_v59 = vld [vmem:[%s5344_s2 + $0x7d8] sm:$0xff] }
 0x155   :  { %2197 = vmatprep.subr.bf16.mxu1 %v2196_v62  ;;  %v1415_v62 = vld [vmem:[%s5347_s3 + $0xf0] sm:$0xff]  ;;  %2557 = vmatprep.subr.bf16.mxu0 %v2556_v60  ;;  %v2216_v3 = vpack.c.bf16 %v493_v59, %v485_v56  ;;  %v1432_v50 = vld [vmem:[%s5347_s3 + $0x178] sm:$0xff] }
 0x156   :  { %v2558_v63 = vpack.c.bf16 %v1415_v62, %v1413_v61  ;;  %v2572_v53 = vpack.c.bf16 %v1432_v50, %v1430_v49  ;;  %v556_v59 = vld [vmem:[%s5344_s2 + $0x9d0] sm:$0xff]  ;;  %v565_v61 = vld [vmem:[%s5344_s2 + $0xa18] sm:$0xff]  ;;  %v1434_v62 = vld [vmem:[%s5347_s3 + $0x188] sm:$0xff] }
 0x157   :  { %v2234_v5 = vpack.c.bf16 %v556_v59, %v548_v58  ;;  %v628_v58 = vld [vmem:[%s5344_s2 + $0xc10] sm:$0xff] }
 0x158   :  { %2199 = vmatpush1.bf16.msra.mxu1 %v2198_v11  ;;  %2559 = vmatpush1.bf16.msra.mxu0 %v2558_v63  ;;  %v509_v11 = vld [vmem:[%s5344_s2 + $0x858] sm:$0xff]  ;;  %v636_v59 = vld [vmem:[%s5344_s2 + $0xc50] sm:$0xff] }
 0x159   :  { %2201 = vmatprep.subr.bf16.mxu1 %v2200_v14  ;;  %v1419_v14 = vld [vmem:[%s5347_s3 + $0x110] sm:$0xff]  ;;  %2561 = vmatprep.subr.bf16.mxu0 %v2560_v12  ;;  %v2220_v19 = vpack.c.bf16 %v509_v11, %v501_v4  ;;  %v1436_v63 = vld [vmem:[%s5347_s3 + $0x198] sm:$0xff] }
 0x15a   :  { %v2562_v15 = vpack.c.bf16 %v1419_v14, %v1417_v13  ;;  %v2576_v1 = vpack.c.bf16 %v1436_v63, %v1434_v62  ;;  %v572_v11 = vld [vmem:[%s5344_s2 + $0xa50] sm:$0xff]  ;;  %v581_v13 = vld [vmem:[%s5344_s2 + $0xa98] sm:$0xff]  ;;  %v1438_v14 = vld [vmem:[%s5347_s3 + $0x1a8] sm:$0xff]  ;;  %v2254_v62 = vpack.c.bf16 %v636_v59, %v628_v58 }
 0x15b   :  { %v2238_v24 = vpack.c.bf16 %v572_v11, %v564_v10  ;;  %v660_v10 = vld [vmem:[%s5344_s2 + $0xd10] sm:$0xff]  ;;  %v289_v58 = vld [vmem:[%s5344_s2 + $0x178] sm:$0xff] }
 0x15c   :  { %2203 = vmatpush1.bf16.msra.mxu1 %v2202_v26  ;;  %2563 = vmatpush1.bf16.msra.mxu0 %v2562_v15  ;;  %v525_v26 = vld [vmem:[%s5344_s2 + $0x8d8] sm:$0xff]  ;;  %v668_v11 = vld [vmem:[%s5344_s2 + $0xd50] sm:$0xff] }
 0x15d   :  { %2205 = vmatprep.subr.bf16.mxu1 %v2204_v30  ;;  %v1423_v30 = vld [vmem:[%s5347_s3 + $0x130] sm:$0xff]  ;;  %2565 = vmatprep.subr.bf16.mxu0 %v2564_v27  ;;  %v2224_v34 = vpack.c.bf16 %v525_v26, %v517_v21  ;;  %v1440_v15 = vld [vmem:[%s5347_s3 + $0x1b8] sm:$0xff] }
 0x15e   :  { %v2566_v31 = vpack.c.bf16 %v1423_v30, %v1421_v29  ;;  %v2580_v17 = vpack.c.bf16 %v1440_v15, %v1438_v14  ;;  %v588_v26 = vld [vmem:[%s5344_s2 + $0xad0] sm:$0xff]  ;;  %v597_v29 = vld [vmem:[%s5344_s2 + $0xb18] sm:$0xff]  ;;  %v1442_v30 = vld [vmem:[%s5347_s3 + $0x1c8] sm:$0xff]  ;;  %v2262_v14 = vpack.c.bf16 %v668_v11, %v660_v10 }
 0x15f   :  { %v2242_v36 = vpack.c.bf16 %v588_v26, %v580_v25  ;;  %v692_v25 = vld [vmem:[%s5344_s2 + $0xe10] sm:$0xff]  ;;  %v321_v10 = vld [vmem:[%s5344_s2 + $0x278] sm:$0xff] }
 0x160   :  { %2207 = vmatpush1.bf16.msra.mxu1 %v2206_v39  ;;  %2567 = vmatpush1.bf16.msra.mxu0 %v2566_v31  ;;  %v541_v39 = vld [vmem:[%s5344_s2 + $0x958] sm:$0xff]  ;;  %v700_v26 = vld [vmem:[%s5344_s2 + $0xe50] sm:$0xff] }
 0x161   :  { %2209 = vmatprep.subr.bf16.mxu1 %v2208_v42  ;;  %v1427_v42 = vld [vmem:[%s5347_s3 + $0x150] sm:$0xff]  ;;  %v2228_v46 = vpack.c.bf16 %v541_v39, %v533_v35  ;;  %2569 = vmatprep.subr.bf16.mxu0 %v2568_v40  ;;  %v1444_v31 = vld [vmem:[%s5347_s3 + $0x1d8] sm:$0xff] }
 0x162   :  { %v2570_v47 = vpack.c.bf16 %v1427_v42, %v1425_v41  ;;  %v2584_v33 = vpack.c.bf16 %v1444_v31, %v1442_v30  ;;  %v604_v39 = vld [vmem:[%s5344_s2 + $0xb50] sm:$0xff]  ;;  %v613_v41 = vld [vmem:[%s5344_s2 + $0xb98] sm:$0xff]  ;;  %v1446_v42 = vld [vmem:[%s5347_s3 + $0x1e8] sm:$0xff]  ;;  %v2270_v30 = vpack.c.bf16 %v700_v26, %v692_v25 }
 0x163   :  { %v2246_v49 = vpack.c.bf16 %v604_v39, %v596_v38  ;;  %v724_v38 = vld [vmem:[%s5344_s2 + $0xf10] sm:$0xff]  ;;  %v353_v25 = vld [vmem:[%s5344_s2 + $0x378] sm:$0xff] }
 0x164   :  { %2211 = vmatpush1.bf16.msra.mxu1 %v2210_v51  ;;  %v557_v51 = vld [vmem:[%s5344_s2 + $0x9d8] sm:$0xff]  ;;  %2571 = vmatpush1.bf16.msra.mxu0 %v2570_v47  ;;  %v732_v39 = vld [vmem:[%s5344_s2 + $0xf50] sm:$0xff] }
 0x165   :  { %2213 = vmatprep.subr.bf16.mxu1 %v2212_v55  ;;  %v1431_v55 = vld [vmem:[%s5347_s3 + $0x170] sm:$0xff]  ;;  %2573 = vmatprep.subr.bf16.mxu0 %v2572_v53  ;;  %v2232_v60 = vpack.c.bf16 %v557_v51, %v549_v48  ;;  %v1448_v47 = vld [vmem:[%s5347_s3 + $0x1f8] sm:$0xff] }
 0x166   :  { %v2574_v56 = vpack.c.bf16 %v1431_v55, %v1429_v54  ;;  %v2588_v44 = vpack.c.bf16 %v1448_v47, %v1446_v42  ;;  %v612_v51 = vld [vmem:[%s5344_s2 + $0xb90] sm:$0xff]  ;;  %v629_v54 = vld [vmem:[%s5344_s2 + $0xc18] sm:$0xff] }
 0x167   :  { %v620_v53 = vld [vmem:[%s5344_s2 + $0xbd0] sm:$0xff]  ;;  %v637_v55 = vld [vmem:[%s5344_s2 + $0xc58] sm:$0xff] }
 0x168   :  { %2215 = vmatpush1.bf16.msra.mxu1 %v2214_v0  ;;  %v573_v0 = vld [vmem:[%s5344_s2 + $0xa58] sm:$0xff]  ;;  %2575 = vmatpush1.bf16.msra.mxu0 %v2574_v56  ;;  %v2250_v56 = vpack.c.bf16 %v620_v53, %v612_v51  ;;  %v264_v51 = vld [vmem:[%s5344_s2 + $0xb0] sm:$0xff] }
 0x169   :  { %2217 = vmatprep.subr.bf16.mxu1 %v2216_v3  ;;  %v1435_v3 = vld [vmem:[%s5347_s3 + $0x190] sm:$0xff]  ;;  %2577 = vmatprep.subr.bf16.mxu0 %v2576_v1  ;;  %v2236_v12 = vpack.c.bf16 %v573_v0, %v565_v61  ;;  %v653_v61 = vld [vmem:[%s5344_s2 + $0xcd8] sm:$0xff] }
 0x16a   :  { %v2578_v4 = vpack.c.bf16 %v1435_v3, %v1433_v2  ;;  %v644_v0 = vld [vmem:[%s5344_s2 + $0xc90] sm:$0xff]  ;;  %v661_v2 = vld [vmem:[%s5344_s2 + $0xd18] sm:$0xff] }
 0x16b   :  { %v652_v1 = vld [vmem:[%s5344_s2 + $0xcd0] sm:$0xff]  ;;  %v669_v3 = vld [vmem:[%s5344_s2 + $0xd58] sm:$0xff] }
 0x16c   :  { %2219 = vmatpush1.bf16.msra.mxu1 %v2218_v16  ;;  %v589_v16 = vld [vmem:[%s5344_s2 + $0xad8] sm:$0xff]  ;;  %2579 = vmatpush1.bf16.msra.mxu0 %v2578_v4  ;;  %v2258_v4 = vpack.c.bf16 %v652_v1, %v644_v0 }
 0x16d   :  { %2221 = vmatprep.subr.bf16.mxu1 %v2220_v19  ;;  %v1439_v19 = vld [vmem:[%s5347_s3 + $0x1b0] sm:$0xff]  ;;  %2581 = vmatprep.subr.bf16.mxu0 %v2580_v17  ;;  %v2240_v27 = vpack.c.bf16 %v589_v16, %v581_v13  ;;  %v685_v13 = vld [vmem:[%s5344_s2 + $0xdd8] sm:$0xff] }
 0x16e   :  { %v2582_v21 = vpack.c.bf16 %v1439_v19, %v1437_v18  ;;  %v676_v16 = vld [vmem:[%s5344_s2 + $0xd90] sm:$0xff]  ;;  %v693_v18 = vld [vmem:[%s5344_s2 + $0xe18] sm:$0xff] }
 0x16f   :  { %1024 = vmatmul.mubr.f32.vlgmr.msra.gmra.mrb[4].mxu1 %v3418_v28  ;;  %v684_v17 = vld [vmem:[%s5344_s2 + $0xdd0] sm:$0xff]  ;;  %v701_v19 = vld [vmem:[%s5344_s2 + $0xe58] sm:$0xff] }
 0x170   :  { %2223 = vmatpush1.bf16.msra.mxu1 %v2222_v32  ;;  %1979 = vmatprep.mubr.msk.f32.mxu1 %vm788_vm4, %v3471_v52  ;;  %v605_v32 = vld [vmem:[%s5344_s2 + $0xb58] sm:$0xff] }
 0x171   :  { %2225 = vmatprep.subr.bf16.mxu1 %v2224_v34  ;;  %2583 = vmatpush1.bf16.msra.mxu0 %v2582_v21  ;;  %v1443_v34 = vld [vmem:[%s5347_s3 + $0x1d0] sm:$0xff]  ;;  %v2244_v40 = vpack.c.bf16 %v605_v32, %v597_v29  ;;  %v2266_v21 = vpack.c.bf16 %v684_v17, %v676_v16  ;;  %v717_v29 = vld [vmem:[%s5344_s2 + $0xed8] sm:$0xff] }
 0x172   :  { %v2586_v35 = vpack.c.bf16 %v1443_v34, %v1441_v8  ;;  %2585 = vmatprep.subr.bf16.mxu0 %v2584_v33  ;;  %v708_v32 = vld [vmem:[%s5344_s2 + $0xe90] sm:$0xff]  ;;  %v725_v8 = vld [vmem:[%s5344_s2 + $0xf18] sm:$0xff] }
 0x173   :  { %v716_v33 = vld [vmem:[%s5344_s2 + $0xed0] sm:$0xff]  ;;  %v733_v34 = vld [vmem:[%s5344_s2 + $0xf58] sm:$0xff] }
 0x174   :  { %2227 = vmatpush1.bf16.msra.mxu1 %v2226_v43  ;;  %v621_v43 = vld [vmem:[%s5344_s2 + $0xbd8] sm:$0xff] }
 0x175   :  { %2229 = vmatprep.subr.bf16.mxu1 %v2228_v46  ;;  %2587 = vmatpush1.bf16.msra.mxu0 %v2586_v35  ;;  %v1447_v46 = vld [vmem:[%s5347_s3 + $0x1f0] sm:$0xff]  ;;  %v2248_v50 = vpack.c.bf16 %v621_v43, %v613_v41  ;;  %v2274_v35 = vpack.c.bf16 %v716_v33, %v708_v32  ;;  %v741_v41 = vld [vmem:[%s5344_s2 + $0xf98] sm:$0xf] }
 0x176   :  { %v2590_v48 = vpack.c.bf16 %v1447_v46, %v1445_v45  ;;  %2589 = vmatprep.subr.bf16.mxu0 %v2588_v44  ;;  %v249_v42 = vld [vmem:[%s5344_s2 + $0x38] sm:$0xff]  ;;  %v248_v43 = vld [vmem:[%s5344_s2 + $0x30] sm:$0xff] }
 0x177   :  { %v257_v47 = vld [vmem:[%s5344_s2 + $0x78] sm:$0xff]  ;;  %v256_v44 = vld [vmem:[%s5344_s2 + $0x70] sm:$0xff] }
 0x178   :  { %2231 = vmatpush1.bf16.msra.mxu1 %v2230_v57  ;;  %v2252_v57 = vpack.c.bf16 %v637_v55, %v629_v54  ;;  %v265_v45 = vld [vmem:[%s5344_s2 + $0xb8] sm:$0xff]  ;;  %v272_v54 = vld [vmem:[%s5344_s2 + $0xf0] sm:$0xff]  ;;  %v1450_v55 = vld [vmem:[%s5347_s3 + $0x208] sm:$0xff] }
 0x179   :  { %2233 = vmatprep.subr.bf16.mxu1 %v2232_v60  ;;  %2591 = vmatpush1.bf16.msra.mxu0 %v2590_v48  ;;  %v645_v60 = vld [vmem:[%s5344_s2 + $0xc98] sm:$0xff]  ;;  %v740_v48 = vld [vmem:[%s5344_s2 + $0xf90] sm:$0xf] }
 0x17a   :  { %v2256_v63 = vpack.c.bf16 %v653_v61, %v645_v60  ;;  %v273_v46 = vld [vmem:[%s5344_s2 + $0xf8] sm:$0xff]  ;;  %v2410_v60 = vpack.c.bf16 %v272_v54, %v264_v51  ;;  %v408_v54 = vld [vmem:[%s5344_s2 + $0x530] sm:$0xff] }
 0x17b   :  { %v2408_v53 = vpack.c.bf16 %v273_v46, %v265_v45  ;;  %v297_v0 = vld [vmem:[%s5344_s2 + $0x1b8] sm:$0xff]  ;;  %v392_v46 = vld [vmem:[%s5344_s2 + $0x4b0] sm:$0xff] }
 0x17c   :  { %2235 = vmatpush1.bf16.msra.mxu1 %v2234_v5  ;;  %v2260_v5 = vpack.c.bf16 %v669_v3, %v661_v2  ;;  %v296_v3 = vld [vmem:[%s5344_s2 + $0x1b0] sm:$0xff]  ;;  %v337_v16 = vld [vmem:[%s5344_s2 + $0x2f8] sm:$0xff] }
 0x17d   :  { %2237 = vmatprep.subr.bf16.mxu1 %v2236_v12  ;;  %v677_v12 = vld [vmem:[%s5344_s2 + $0xd98] sm:$0xff] }
 0x17e   :  { %v2264_v15 = vpack.c.bf16 %v685_v13, %v677_v12  ;;  %v312_v13 = vld [vmem:[%s5344_s2 + $0x230] sm:$0xff]  ;;  %v369_v32 = vld [vmem:[%s5344_s2 + $0x3f8] sm:$0xff] }
 0x180   :  { %2239 = vmatpush1.bf16.msra.mxu1 %v2238_v24  ;;  %v2268_v24 = vpack.c.bf16 %v701_v19, %v693_v18  ;;  %v328_v19 = vld [vmem:[%s5344_s2 + $0x2b0] sm:$0xff] }
 0x181   :  { %2241 = vmatprep.subr.bf16.mxu1 %v2240_v27  ;;  %v709_v27 = vld [vmem:[%s5344_s2 + $0xe98] sm:$0xff] }
 0x182   :  { %v2272_v31 = vpack.c.bf16 %v717_v29, %v709_v27  ;;  %v344_v29 = vld [vmem:[%s5344_s2 + $0x330] sm:$0xff] }
 0x184   :  { %2243 = vmatpush1.bf16.msra.mxu1 %v2242_v36  ;;  %v2276_v36 = vpack.c.bf16 %v733_v34, %v725_v8  ;;  %v360_v34 = vld [vmem:[%s5344_s2 + $0x3b0] sm:$0xff] }
 0x185   :  { %2245 = vmatprep.subr.bf16.mxu1 %v2244_v40  ;;  %v2278_v40 = vpack.c.bf16 %v732_v39, %v724_v38  ;;  %v385_v38 = vld [vmem:[%s5344_s2 + $0x478] sm:$0xff] }
 0x188   :  { %2247 = vmatpush1.bf16.msra.mxu1 %v2246_v49  ;;  %v2404_v49 = vpack.c.bf16 %v257_v47, %v249_v42  ;;  %v384_v42 = vld [vmem:[%s5344_s2 + $0x470] sm:$0xff]  ;;  %v393_v47 = vld [vmem:[%s5344_s2 + $0x4b8] sm:$0xff] }
 0x189   :  { %2249 = vmatprep.subr.bf16.mxu1 %v2248_v50  ;;  %v2406_v50 = vpack.c.bf16 %v256_v44, %v248_v43  ;;  %v401_v43 = vld [vmem:[%s5344_s2 + $0x4f8] sm:$0xff] }
 0x18a   :  { %v2440_v45 = vpack.c.bf16 %v401_v43, %v393_v47 }
 0x18c   :  { %2251 = vmatpush1.bf16.msra.mxu1 %v2250_v56  ;;  %v1452_v56 = vld [vmem:[%s5347_s3 + $0x218] sm:$0xff] }
 0x18d   :  { %2253 = vmatprep.subr.bf16.mxu1 %v2252_v57  ;;  %v281_v57 = vld [vmem:[%s5344_s2 + $0x138] sm:$0xff]  ;;  %v2592_v59 = vpack.c.bf16 %v1452_v56, %v1450_v55  ;;  %v416_v55 = vld [vmem:[%s5344_s2 + $0x570] sm:$0xff] }
 0x18e   :  { %v2412_v61 = vpack.c.bf16 %v289_v58, %v281_v57  ;;  %v425_v56 = vld [vmem:[%s5344_s2 + $0x5b8] sm:$0xff]  ;;  %v2446_v58 = vpack.c.bf16 %v416_v55, %v408_v54 }
 0x18f   :  { %2593 = vmatprep.subr.bf16.mxu0 %v2592_v59  ;;  %v433_v57 = vld [vmem:[%s5344_s2 + $0x5f8] sm:$0xff] }
 0x190   :  { %2255 = vmatpush1.bf16.msra.mxu1 %v2254_v62  ;;  %v280_v62 = vld [vmem:[%s5344_s2 + $0x130] sm:$0xff]  ;;  %v2448_v59 = vpack.c.bf16 %v433_v57, %v425_v56 }
 0x191   :  { %2257 = vmatprep.subr.bf16.mxu1 %v2256_v63  ;;  %v288_v63 = vld [vmem:[%s5344_s2 + $0x170] sm:$0xff] }
 0x192   :  { %v2414_v1 = vpack.c.bf16 %v288_v63, %v280_v62  ;;  %v441_v62 = vld [vmem:[%s5344_s2 + $0x638] sm:$0xff]  ;;  %v568_v56 = vld [vmem:[%s5344_s2 + $0xa30] sm:$0xff] }
 0x193   :  { %v449_v63 = vld [vmem:[%s5344_s2 + $0x678] sm:$0xff]  ;;  %v576_v57 = vld [vmem:[%s5344_s2 + $0xa70] sm:$0xff] }
 0x194   :  { %2259 = vmatpush1.bf16.msra.mxu1 %v2258_v4  ;;  %v304_v4 = vld [vmem:[%s5344_s2 + $0x1f0] sm:$0xff] }
 0x195   :  { %2261 = vmatprep.subr.bf16.mxu1 %v2260_v5  ;;  %v313_v5 = vld [vmem:[%s5344_s2 + $0x238] sm:$0xff]  ;;  %v2418_v11 = vpack.c.bf16 %v304_v4, %v296_v3 }
 0x196   :  { %v2420_v12 = vpack.c.bf16 %v321_v10, %v313_v5  ;;  %v457_v3 = vld [vmem:[%s5344_s2 + $0x6b8] sm:$0xff] }
 0x197   :  { %v465_v4 = vld [vmem:[%s5344_s2 + $0x6f8] sm:$0xff] }
 0x198   :  { %2263 = vmatpush1.bf16.msra.mxu1 %v2262_v14  ;;  %v320_v14 = vld [vmem:[%s5344_s2 + $0x270] sm:$0xff]  ;;  %v2456_v10 = vpack.c.bf16 %v465_v4, %v457_v3 }
 0x199   :  { %2265 = vmatprep.subr.bf16.mxu1 %v2264_v15  ;;  %v329_v15 = vld [vmem:[%s5344_s2 + $0x2b8] sm:$0xff]  ;;  %v2422_v17 = vpack.c.bf16 %v320_v14, %v312_v13  ;;  %v600_v4 = vld [vmem:[%s5344_s2 + $0xb30] sm:$0xff] }
 0x19a   :  { %v2424_v18 = vpack.c.bf16 %v337_v16, %v329_v15  ;;  %v473_v13 = vld [vmem:[%s5344_s2 + $0x738] sm:$0xff] }
 0x19b   :  { %v481_v14 = vld [vmem:[%s5344_s2 + $0x778] sm:$0xff] }
 0x19c   :  { %2267 = vmatpush1.bf16.msra.mxu1 %v2266_v21  ;;  %v336_v21 = vld [vmem:[%s5344_s2 + $0x2f0] sm:$0xff]  ;;  %v2460_v16 = vpack.c.bf16 %v481_v14, %v473_v13  ;;  %v1449_v14 = vld [vmem:[%s5347_s3 + $0x200] sm:$0xff] }
 0x19d   :  { %2269 = vmatprep.subr.bf16.mxu1 %v2268_v24  ;;  %v345_v24 = vld [vmem:[%s5344_s2 + $0x338] sm:$0xff]  ;;  %v2426_v26 = vpack.c.bf16 %v336_v21, %v328_v19 }
 0x19e   :  { %v2428_v27 = vpack.c.bf16 %v353_v25, %v345_v24  ;;  %v489_v19 = vld [vmem:[%s5344_s2 + $0x7b8] sm:$0xff] }
 0x19f   :  { %v497_v21 = vld [vmem:[%s5344_s2 + $0x7f8] sm:$0xff] }
 0x1a0   :  { %2271 = vmatpush1.bf16.msra.mxu1 %v2270_v30  ;;  %v352_v30 = vld [vmem:[%s5344_s2 + $0x370] sm:$0xff]  ;;  %v2464_v25 = vpack.c.bf16 %v497_v21, %v489_v19  ;;  %v1456_v19 = vld [vmem:[%s5347_s3 + $0x238] sm:$0xff] }
 0x1a1   :  { %2273 = vmatprep.subr.bf16.mxu1 %v2272_v31  ;;  %v361_v31 = vld [vmem:[%s5344_s2 + $0x3b8] sm:$0xff]  ;;  %v2430_v33 = vpack.c.bf16 %v352_v30, %v344_v29 }
 0x1a2   :  { %v2432_v8 = vpack.c.bf16 %v369_v32, %v361_v31  ;;  %v505_v29 = vld [vmem:[%s5344_s2 + $0x838] sm:$0xff] }
 0x1a3   :  { %v513_v30 = vld [vmem:[%s5344_s2 + $0x878] sm:$0xff] }
 0x1a4   :  { %2275 = vmatpush1.bf16.msra.mxu1 %v2274_v35  ;;  %v368_v35 = vld [vmem:[%s5344_s2 + $0x3f0] sm:$0xff]  ;;  %v2468_v32 = vpack.c.bf16 %v513_v30, %v505_v29 }
 0x1a5   :  { %2277 = vmatprep.subr.bf16.mxu1 %v2276_v36  ;;  %v377_v36 = vld [vmem:[%s5344_s2 + $0x438] sm:$0xff]  ;;  %v2434_v39 = vpack.c.bf16 %v368_v35, %v360_v34 }
 0x1a6   :  { %v521_v34 = vld [vmem:[%s5344_s2 + $0x8b8] sm:$0xff] }
 0x1a7   :  { %v529_v35 = vld [vmem:[%s5344_s2 + $0x8f8] sm:$0xff] }
 0x1a8   :  { %2279 = vmatpush1.bf16.msra.mxu1 %v2278_v40  ;;  %v2436_v40 = vpack.c.bf16 %v385_v38, %v377_v36  ;;  %v2472_v38 = vpack.c.bf16 %v529_v35, %v521_v34  ;;  %v1453_v35 = vld [vmem:[%s5347_s3 + $0x220] sm:$0xff] }
 0x1a9   :  { %1977 = vmatprep.subr.msk.mxu1 %vm792_vm5, %v741_v41  ;;  %v376_v41 = vld [vmem:[%s5344_s2 + $0x430] sm:$0xff] }
 0x1aa   :  { %v2438_v44 = vpack.c.bf16 %v384_v42, %v376_v41  ;;  %v537_v41 = vld [vmem:[%s5344_s2 + $0x938] sm:$0xff] }
 0x1ab   :  { %v545_v42 = vld [vmem:[%s5344_s2 + $0x978] sm:$0xff] }
 0x1ac   :  { %1978 = vmatpush1.msk.msra.mxu1 %vm792_vm5, %v740_v48  ;;  %v400_v48 = vld [vmem:[%s5344_s2 + $0x4f0] sm:$0xff]  ;;  %v2476_v43 = vpack.c.bf16 %v545_v42, %v537_v41 }
 0x1ad   :  { %1095 = vmatmul.mubr.f32.vlgmr.msra.gmra.mrb[4].mxu1 %v3782_v37  ;;  %2405 = vmatprep.subr.bf16.mxu1 %v2404_v49  ;;  %v409_v49 = vld [vmem:[%s5344_s2 + $0x538] sm:$0xff]  ;;  %v2442_v51 = vpack.c.bf16 %v400_v48, %v392_v46  ;;  %v632_v42 = vld [vmem:[%s5344_s2 + $0xc30] sm:$0xff] }
 0x1ae   :  { %2407 = vmatpush1.bf16.msra.mxu1 %v2406_v50  ;;  %1307 = vmatprep.mubr.f32.mxu1 %v3410_v23  ;;  %v305_v23 = vld [vmem:[%s5344_s2 + $0x1f8] sm:$0xff] }
 0x1af   :  { %2409 = vmatprep.subr.bf16.mxu1 %v2408_v53  ;;  %v2416_v2 = vpack.c.bf16 %v305_v23, %v297_v0  ;;  %v417_v50 = vld [vmem:[%s5344_s2 + $0x578] sm:$0xff]  ;;  %v2452_v23 = vpack.c.bf16 %v449_v63, %v441_v62  ;;  %v584_v62 = vld [vmem:[%s5344_s2 + $0xab0] sm:$0xff] }
 0x1b0   :  { %v2444_v53 = vpack.c.bf16 %v417_v50, %v409_v49  ;;  %v553_v46 = vld [vmem:[%s5344_s2 + $0x9b8] sm:$0xff]  ;;  %v552_v49 = vld [vmem:[%s5344_s2 + $0x9b0] sm:$0xff] }
 0x1b1   :  { %v560_v50 = vld [vmem:[%s5344_s2 + $0x9f0] sm:$0xff] }
 0x1b2   :  { %2411 = vmatpush1.bf16.msra.mxu1 %v2410_v60  ;;  %v424_v60 = vld [vmem:[%s5344_s2 + $0x5b0] sm:$0xff]  ;;  %v2482_v54 = vpack.c.bf16 %v560_v50, %v552_v49  ;;  %v1462_v49 = vld [vmem:[%s5347_s3 + $0x268] sm:$0xff]  ;;  %v1464_v50 = vld [vmem:[%s5347_s3 + $0x278] sm:$0xff] }
 0x1b3   :  { %2413 = vmatprep.subr.bf16.mxu1 %v2412_v61  ;;  %v432_v61 = vld [vmem:[%s5344_s2 + $0x5f0] sm:$0xff] }
 0x1b4   :  { %v2450_v0 = vpack.c.bf16 %v432_v61, %v424_v60  ;;  %v2486_v60 = vpack.c.bf16 %v576_v57, %v568_v56  ;;  %v592_v63 = vld [vmem:[%s5344_s2 + $0xaf0] sm:$0xff]  ;;  %v673_v56 = vld [vmem:[%s5344_s2 + $0xd78] sm:$0xff] }
 0x1b6   :  { %2415 = vmatpush1.bf16.msra.mxu1 %v2414_v1  ;;  %v440_v1 = vld [vmem:[%s5344_s2 + $0x630] sm:$0xff] }
 0x1b7   :  { %2417 = vmatprep.subr.bf16.mxu1 %v2416_v2  ;;  %v448_v2 = vld [vmem:[%s5344_s2 + $0x670] sm:$0xff] }
 0x1b8   :  { %v2454_v5 = vpack.c.bf16 %v448_v2, %v440_v1  ;;  %v4638_v1 = vld [vmem:[%s5346_s4 + $0x4] sm:$0xff]  ;;  %v2490_v2 = vpack.c.bf16 %v592_v63, %v584_v62  ;;  %v1468_v63 = vld [vmem:[%s5347_s3 + $0x298] sm:$0xff] }
 0x1b9   :  { %v751_v13 = vrot.slane %v4638_v1, %v3379_v9  ;;  %v1466_v62 = vld [vmem:[%s5347_s3 + $0x288] sm:$0xff] }
 0x1ba   :  { %2419 = vmatpush1.bf16.msra.mxu1 %v2418_v11  ;;  %v456_v11 = vld [vmem:[%s5344_s2 + $0x6b0] sm:$0xff] }
 0x1bb   :  { %2421 = vmatprep.subr.bf16.mxu1 %v2420_v12  ;;  %v464_v12 = vld [vmem:[%s5344_s2 + $0x6f0] sm:$0xff] }
 0x1bc   :  { %v2458_v15 = vpack.c.bf16 %v464_v12, %v456_v11  ;;  %v617_v11 = vld [vmem:[%s5344_s2 + $0xbb8] sm:$0xff] }
 0x1bd   :  { %v625_v12 = vld [vmem:[%s5344_s2 + $0xbf8] sm:$0xff] }
 0x1be   :  { %2423 = vmatpush1.bf16.msra.mxu1 %v2422_v17  ;;  %v472_v17 = vld [vmem:[%s5344_s2 + $0x730] sm:$0xff] }
 0x1bf   :  { %2425 = vmatprep.subr.bf16.mxu1 %v2424_v18  ;;  %v480_v18 = vld [vmem:[%s5344_s2 + $0x770] sm:$0xff] }
 0x1c0   :  { %v2462_v24 = vpack.c.bf16 %v480_v18, %v472_v17  ;;  %v1454_v18 = vld [vmem:[%s5347_s3 + $0x228] sm:$0xff] }
 0x1c1   :  { %v2596_v34 = vpack.c.bf16 %v1456_v19, %v1454_v18  ;;  %v688_v18 = vld [vmem:[%s5344_s2 + $0xdf0] sm:$0xff]  ;;  %v697_v19 = vld [vmem:[%s5344_s2 + $0xe38] sm:$0xff] }
 0x1c2   :  { %2427 = vmatpush1.bf16.msra.mxu1 %v2426_v26  ;;  %v488_v26 = vld [vmem:[%s5344_s2 + $0x7b0] sm:$0xff] }
 0x1c3   :  { %2429 = vmatprep.subr.bf16.mxu1 %v2428_v27  ;;  %v496_v27 = vld [vmem:[%s5344_s2 + $0x7f0] sm:$0xff] }
 0x1c4   :  { %v2466_v31 = vpack.c.bf16 %v496_v27, %v488_v26  ;;  %v616_v26 = vld [vmem:[%s5344_s2 + $0xbb0] sm:$0xff] }
 0x1c5   :  { %v624_v27 = vld [vmem:[%s5344_s2 + $0xbf0] sm:$0xff] }
 0x1c6   :  { %2431 = vmatpush1.bf16.msra.mxu1 %v2430_v33  ;;  %v504_v33 = vld [vmem:[%s5344_s2 + $0x830] sm:$0xff] }
 0x1c7   :  { %2433 = vmatprep.subr.bf16.mxu1 %v2432_v8  ;;  %v512_v8 = vld [vmem:[%s5344_s2 + $0x870] sm:$0xff] }
 0x1c8   :  { %v2470_v36 = vpack.c.bf16 %v512_v8, %v504_v33 }
 0x1ca   :  { %2435 = vmatpush1.bf16.msra.mxu1 %v2434_v39  ;;  %v520_v39 = vld [vmem:[%s5344_s2 + $0x8b0] sm:$0xff] }
 0x1cb   :  { %2437 = vmatprep.subr.bf16.mxu1 %v2436_v40  ;;  %v528_v40 = vld [vmem:[%s5344_s2 + $0x8f0] sm:$0xff] }
 0x1cc   :  { %v2474_v47 = vpack.c.bf16 %v528_v40, %v520_v39  ;;  %v1458_v39 = vld [vmem:[%s5347_s3 + $0x248] sm:$0xff]  ;;  %v1460_v40 = vld [vmem:[%s5347_s3 + $0x258] sm:$0xff] }
 0x1ce   :  { %2439 = vmatpush1.bf16.msra.mxu1 %v2438_v44  ;;  %v536_v44 = vld [vmem:[%s5344_s2 + $0x930] sm:$0xff] }
 0x1cf   :  { %2441 = vmatprep.subr.bf16.mxu1 %v2440_v45  ;;  %v544_v45 = vld [vmem:[%s5344_s2 + $0x970] sm:$0xff] }
 0x1d2   :  { %2443 = vmatpush1.bf16.msra.mxu1 %v2442_v51  ;;  %v569_v51 = vld [vmem:[%s5344_s2 + $0xa38] sm:$0xff] }
 0x1d3   :  { %2445 = vmatprep.subr.bf16.mxu1 %v2444_v53  ;;  %v577_v53 = vld [vmem:[%s5344_s2 + $0xa78] sm:$0xff] }
 0x1d4   :  { %v2484_v55 = vpack.c.bf16 %v577_v53, %v569_v51  ;;  %v648_v53 = vld [vmem:[%s5344_s2 + $0xcb0] sm:$0xff] }
 0x1d6   :  { %2447 = vmatpush1.bf16.msra.mxu1 %v2446_v58  ;;  %v585_v58 = vld [vmem:[%s5344_s2 + $0xab8] sm:$0xff] }
 0x1d7   :  { %2449 = vmatprep.subr.bf16.mxu1 %v2448_v59  ;;  %v593_v59 = vld [vmem:[%s5344_s2 + $0xaf8] sm:$0xff] }
 0x1d8   :  { %v2488_v61 = vpack.c.bf16 %v593_v59, %v585_v58  ;;  %v2604_v58 = vpack.c.bf16 %v1464_v50, %v1462_v49  ;;  %v1461_v59 = vld [vmem:[%s5347_s3 + $0x260] sm:$0xff] }
 0x1da   :  { %2451 = vmatpush1.bf16.msra.mxu1 %v2450_v0  ;;  %v601_v0 = vld [vmem:[%s5344_s2 + $0xb38] sm:$0xff] }
 0x1db   :  { %2453 = vmatprep.subr.bf16.mxu1 %v2452_v23  ;;  %v609_v23 = vld [vmem:[%s5344_s2 + $0xb78] sm:$0xff] }
 0x1dc   :  { %v2492_v3 = vpack.c.bf16 %v609_v23, %v601_v0  ;;  %v664_v23 = vld [vmem:[%s5344_s2 + $0xd30] sm:$0xff] }
 0x1de   :  { %2455 = vmatpush1.bf16.msra.mxu1 %v2454_v5  ;;  %v608_v5 = vld [vmem:[%s5344_s2 + $0xb70] sm:$0xff] }
 0x1df   :  { %2457 = vmatprep.subr.bf16.mxu1 %v2456_v10  ;;  %v755_v10 = vrot.slane %v4638_v1, %v3371_v7  ;;  %v2494_v17 = vpack.c.bf16 %v608_v5, %v600_v4  ;;  %v689_v4 = vld [vmem:[%s5344_s2 + $0xdf8] sm:$0xff] }
 0x1e2   :  { %2459 = vmatpush1.bf16.msra.mxu1 %v2458_v15  ;;  %v1451_v15 = vld [vmem:[%s5347_s3 + $0x210] sm:$0xff] }
 0x1e3   :  { %2461 = vmatprep.subr.bf16.mxu1 %v2460_v16  ;;  %v2594_v33 = vpack.c.bf16 %v1451_v15, %v1449_v14  ;;  %v1470_v14 = vld [vmem:[%s5347_s3 + $0x2a8] sm:$0xff]  ;;  %v1472_v15 = vld [vmem:[%s5347_s3 + $0x2b8] sm:$0xff] }
 0x1e6   :  { %2463 = vmatpush1.bf16.msra.mxu1 %v2462_v24 }
 0x1e7   :  { %2465 = vmatprep.subr.bf16.mxu1 %v2464_v25  ;;  %v2496_v25 = vpack.c.bf16 %v625_v12, %v617_v11  ;;  %v1465_v11 = vld [vmem:[%s5347_s3 + $0x280] sm:$0xff]  ;;  %v1467_v12 = vld [vmem:[%s5347_s3 + $0x290] sm:$0xff] }
 0x1ea   :  { %2467 = vmatpush1.bf16.msra.mxu1 %v2466_v31  ;;  %v633_v31 = vld [vmem:[%s5344_s2 + $0xc38] sm:$0xff] }
 0x1eb   :  { %2469 = vmatprep.subr.bf16.mxu1 %v2468_v32  ;;  %v641_v32 = vld [vmem:[%s5344_s2 + $0xc78] sm:$0xff] }
 0x1ec   :  { %v2500_v41 = vpack.c.bf16 %v641_v32, %v633_v31  ;;  %v1474_v32 = vld [vmem:[%s5347_s3 + $0x2c8] sm:$0xff] }
 0x1ed   :  { %1308 = vmatmul.mubr.f32.vlgmr.msra.gmra.mrb[6].mxu1 %v3418_v28  ;;  %v561_v28 = vld [vmem:[%s5344_s2 + $0x9f8] sm:$0xff] }
 0x1ee   :  { %2471 = vmatpush1.bf16.msra.mxu1 %v2470_v36  ;;  %1985 = vmatprep.mubr.msk.f32.mxu1 %vm788_vm4, %v3471_v52  ;;  %v2478_v52 = vpack.c.bf16 %v544_v45, %v536_v44  ;;  %v2480_v48 = vpack.c.bf16 %v561_v28, %v553_v46  ;;  %v1455_v36 = vld [vmem:[%s5347_s3 + $0x230] sm:$0xff]  ;;  %v657_v44 = vld [vmem:[%s5344_s2 + $0xcf8] sm:$0xff]  ;;  %v2600_v46 = vpack.c.bf16 %v1460_v40, %v1458_v39  ;;  %v1457_v28 = vld [vmem:[%s5347_s3 + $0x240] sm:$0xff] }
 0x1ef   :  { %2473 = vmatprep.subr.bf16.mxu1 %v2472_v38  ;;  %v2498_v38 = vpack.c.bf16 %v624_v27, %v616_v26  ;;  %v2598_v45 = vpack.c.bf16 %v1455_v36, %v1453_v35  ;;  %v2612_v26 = vpack.c.bf16 %v1472_v15, %v1470_v14  ;;  %v1469_v27 = vld [vmem:[%s5347_s3 + $0x2a0] sm:$0xff]  ;;  %v704_v35 = vld [vmem:[%s5344_s2 + $0xe70] sm:$0xff]  ;;  %v713_v36 = vld [vmem:[%s5344_s2 + $0xeb8] sm:$0xff] }
 0x1f0   :  { %v744_v14 = vld [vmem:[%s5344_s2 + $0xfb0] sm:$0xf] }
 0x1f2   :  { %2475 = vmatpush1.bf16.msra.mxu1 %v2474_v47  ;;  %v640_v47 = vld [vmem:[%s5344_s2 + $0xc70] sm:$0xff] }
 0x1f3   :  { %2477 = vmatprep.subr.bf16.mxu1 %v2476_v43  ;;  %v649_v43 = vld [vmem:[%s5344_s2 + $0xcb8] sm:$0xff] }
 0x1f4   :  { %v2504_v51 = vpack.c.bf16 %v657_v44, %v649_v43  ;;  %v1478_v43 = vld [vmem:[%s5347_s3 + $0x2e8] sm:$0xff]  ;;  %v1480_v44 = vld [vmem:[%s5347_s3 + $0x2f8] sm:$0xff] }
 0x1f5   :  { %v2620_v50 = vpack.c.bf16 %v1480_v44, %v1478_v43 }
 0x1f6   :  { %2479 = vmatpush1.bf16.msra.mxu1 %v2478_v52  ;;  %v1459_v52 = vld [vmem:[%s5347_s3 + $0x250] sm:$0xff] }
 0x1f7   :  { %2481 = vmatprep.subr.bf16.mxu1 %v2480_v48  ;;  %v2502_v48 = vpack.c.bf16 %v640_v47, %v632_v42  ;;  %v2602_v57 = vpack.c.bf16 %v1459_v52, %v1457_v28  ;;  %v1475_v42 = vld [vmem:[%s5347_s3 + $0x2d0] sm:$0xff]  ;;  %v729_v52 = vld [vmem:[%s5344_s2 + $0xf38] sm:$0xff] }
 0x1f8   :  { %v720_v28 = vld [vmem:[%s5344_s2 + $0xef0] sm:$0xff] }
 0x1fa   :  { %2483 = vmatpush1.bf16.msra.mxu1 %v2482_v54  ;;  %v656_v54 = vld [vmem:[%s5344_s2 + $0xcf0] sm:$0xff] }
 0x1fb   :  { %2485 = vmatprep.subr.bf16.mxu1 %v2484_v55  ;;  %v665_v55 = vld [vmem:[%s5344_s2 + $0xd38] sm:$0xff] }
 0x1fc   :  { %v2508_v0 = vpack.c.bf16 %v673_v56, %v665_v55  ;;  %v1482_v55 = vld [vmem:[%s5347_s3 + $0x308] sm:$0xff]  ;;  %v1484_v56 = vld [vmem:[%s5347_s3 + $0x318] sm:$0xff] }
 0x1fe   :  { %2487 = vmatpush1.bf16.msra.mxu1 %v2486_v60  ;;  %v1463_v60 = vld [vmem:[%s5347_s3 + $0x270] sm:$0xff] }
 0x1ff   :  { %2489 = vmatprep.subr.bf16.mxu1 %v2488_v61  ;;  %v2506_v61 = vpack.c.bf16 %v656_v54, %v648_v53  ;;  %v2606_v5 = vpack.c.bf16 %v1463_v60, %v1461_v59  ;;  %v1479_v53 = vld [vmem:[%s5347_s3 + $0x2f0] sm:$0xff] }
 0x200   :  { %v736_v59 = vld [vmem:[%s5344_s2 + $0xf70] sm:$0xff] }
 0x202   :  { %v954_v16 = vpop.f32.mrb[2].mxu1  ;;  %2491 = vmatpush1.bf16.msra.mxu1 %v2490_v2  ;;  %v672_v2 = vld [vmem:[%s5344_s2 + $0xd70] sm:$0xff] }
 0x203   :  { %v4668_v21 = vpop.f32.mrb[2].mxu0  ;;  %v956_v24 = vpop.f32.mrb[3].mxu1  ;;  %2493 = vmatprep.subr.bf16.mxu1 %v2492_v3  ;;  %v2776_v8 = vadd.f32 %v954_v16, %v751_v13  ;;  %v681_v3 = vld [vmem:[%s5344_s2 + $0xdb8] sm:$0xff]  ;;  %v2510_v13 = vpack.c.bf16 %v672_v2, %v664_v23  ;;  %v1486_v23 = vld [vmem:[%s5347_s3 + $0x328] sm:$0xff] }
 0x204   :  { %v2777_v29 = vadd.f32 %v956_v24, %v755_v10  ;;  %v4676_v30 = vpop.f32.mrb[3].mxu0  ;;  %v2608_v10 = vpack.c.bf16 %v1468_v63, %v1466_v62  ;;  %v2512_v16 = vpack.c.bf16 %v689_v4, %v681_v3  ;;  %v705_v24 = vld [vmem:[%s5344_s2 + $0xe78] sm:$0xff]  ;;  %v1481_v62 = vld [vmem:[%s5347_s3 + $0x300] sm:$0xff]  ;;  %v1483_v63 = vld [vmem:[%s5347_s3 + $0x310] sm:$0xff] }
 0x205   :  { %v1488_v2 = vld [vmem:[%s5347_s3 + $0x338] sm:$0xff]  ;;  %v2626_v4 = vpack.c.bf16 %v1483_v63, %v1481_v62 }
 0x206   :  { %2495 = vmatpush1.bf16.msra.mxu1 %v2494_v17  ;;  %1715 = vmatprep.mubr.f32.mxu0 %v2777_v29  ;;  %v680_v17 = vld [vmem:[%s5344_s2 + $0xdb0] sm:$0xff]  ;;  %v745_v3 = vld [vmem:[%s5344_s2 + $0xfb8] sm:$0xf] }
 0x207   :  { %1716 = vmatmul.mubr.f32.vlgmr.msra.gmra.mrb[4].mxu0 %v2776_v8  ;;  %2497 = vmatprep.subr.bf16.mxu1 %v2496_v25  ;;  %v2610_v25 = vpack.c.bf16 %v1467_v12, %v1465_v11  ;;  %v1471_v29 = vld [vmem:[%s5347_s3 + $0x2b0] sm:$0xff]  ;;  %v2514_v31 = vpack.c.bf16 %v688_v18, %v680_v17  ;;  %v2516_v8 = vpack.c.bf16 %v705_v24, %v697_v19  ;;  %v1490_v12 = vld [vmem:[%s5347_s3 + $0x348] sm:$0xff]  ;;  %v1489_v17 = vld [vmem:[%s5347_s3 + $0x340] sm:$0xff] }
 0x208   :  { %2595 = vmatpush1.bf16.msra.mxu0 %v2594_v33  ;;  %v1476_v33 = vld [vmem:[%s5347_s3 + $0x2d8] sm:$0xff]  ;;  %v2614_v39 = vpack.c.bf16 %v1471_v29, %v1469_v27  ;;  %v1487_v11 = vld [vmem:[%s5347_s3 + $0x330] sm:$0xff]  ;;  %v1494_v19 = vld [vmem:[%s5347_s3 + $0x368] sm:$0xff] }
 0x209   :  { %2597 = vmatprep.subr.bf16.mxu0 %v2596_v34  ;;  %v696_v34 = vld [vmem:[%s5344_s2 + $0xe30] sm:$0xff]  ;;  %v2616_v40 = vpack.c.bf16 %v1476_v33, %v1474_v32  ;;  %v1496_v24 = vld [vmem:[%s5347_s3 + $0x378] sm:$0xff]  ;;  %v1493_v27 = vld [vmem:[%s5347_s3 + $0x360] sm:$0xff] }
 0x20a   :  { %2499 = vmatpush1.bf16.msra.mxu1 %v2498_v38  ;;  %v721_v38 = vld [vmem:[%s5344_s2 + $0xef8] sm:$0xff]  ;;  %v2518_v47 = vpack.c.bf16 %v704_v35, %v696_v34  ;;  %v1491_v18 = vld [vmem:[%s5347_s3 + $0x350] sm:$0xff]  ;;  %v1502_v35 = vld [vmem:[%s5347_s3 + $0x3a8] sm:$0xff] }
 0x20b   :  { %2501 = vmatprep.subr.bf16.mxu1 %v2500_v41  ;;  %v1473_v41 = vld [vmem:[%s5347_s3 + $0x2c0] sm:$0xff]  ;;  %v1495_v29 = vld [vmem:[%s5347_s3 + $0x370] sm:$0xff] }
 0x20c   :  { %2599 = vmatpush1.bf16.msra.mxu0 %v2598_v45  ;;  %v2520_v45 = vpack.c.bf16 %v721_v38, %v713_v36  ;;  %v2618_v49 = vpack.c.bf16 %v1475_v42, %v1473_v41  ;;  %v2638_v32 = vpack.c.bf16 %v1495_v29, %v1493_v27  ;;  %v1499_v34 = vld [vmem:[%s5347_s3 + $0x390] sm:$0xff]  ;;  %v1504_v36 = vld [vmem:[%s5347_s3 + $0x3b8] sm:$0xff]  ;;  %v1506_v42 = vld [vmem:[%s5347_s3 + $0x3c8] sm:$0xff] }
 0x20d   :  { %2601 = vmatprep.subr.bf16.mxu0 %v2600_v46  ;;  %v712_v46 = vld [vmem:[%s5344_s2 + $0xeb0] sm:$0xff]  ;;  %v1530_v27 = vld [vmem:[%s5347_s3 + $0x488] sm:$0xff]  ;;  %v1532_v29 = vld [vmem:[%s5347_s3 + $0x498] sm:$0xff] }
 0x20e   :  { %2503 = vmatpush1.bf16.msra.mxu1 %v2502_v48  ;;  %v737_v48 = vld [vmem:[%s5344_s2 + $0xf78] sm:$0xff]  ;;  %v2522_v54 = vpack.c.bf16 %v720_v28, %v712_v46  ;;  %v1503_v41 = vld [vmem:[%s5347_s3 + $0x3b0] sm:$0xff]  ;;  %v1510_v28 = vld [vmem:[%s5347_s3 + $0x3e8] sm:$0xff] }
 0x20f   :  { %2505 = vmatprep.subr.bf16.mxu1 %v2504_v51  ;;  %v1477_v51 = vld [vmem:[%s5347_s3 + $0x2e0] sm:$0xff]  ;;  %v1507_v46 = vld [vmem:[%s5347_s3 + $0x3d0] sm:$0xff] }
 0x210   :  { %2603 = vmatpush1.bf16.msra.mxu0 %v2602_v57  ;;  %v2524_v57 = vpack.c.bf16 %v737_v48, %v729_v52  ;;  %v2622_v60 = vpack.c.bf16 %v1479_v53, %v1477_v51  ;;  %v1512_v52 = vld [vmem:[%s5347_s3 + $0x3f8] sm:$0xff]  ;;  %v1511_v51 = vld [vmem:[%s5347_s3 + $0x3f0] sm:$0xff]  ;;  %v1514_v53 = vld [vmem:[%s5347_s3 + $0x408] sm:$0xff] }
 0x211   :  { %2605 = vmatprep.subr.bf16.mxu0 %v2604_v58  ;;  %v728_v58 = vld [vmem:[%s5344_s2 + $0xf30] sm:$0xff] }
 0x212   :  { %2507 = vmatpush1.bf16.msra.mxu1 %v2506_v61  ;;  %v2624_v61 = vpack.c.bf16 %v1484_v56, %v1482_v55 }
 0x213   :  { %2509 = vmatprep.subr.bf16.mxu1 %v2508_v0  ;;  %v2526_v0 = vpack.c.bf16 %v736_v59, %v728_v58  ;;  %v763_v58 = vrot.slane %v4638_v1, %v77_v22  ;;  %v759_v59 = vrot.slane %v4638_v1, %v73_v20  ;;  %v1520_v22 = vld [vmem:[%s5347_s3 + $0x438] sm:$0xff] }
 0x214   :  { %2607 = vmatpush1.bf16.msra.mxu0 %v2606_v5  ;;  %v2628_v5 = vpack.c.bf16 %v1488_v2, %v1486_v23 }
 0x215   :  { %2609 = vmatprep.subr.bf16.mxu0 %v2608_v10  ;;  %v1485_v10 = vld [vmem:[%s5347_s3 + $0x320] sm:$0xff] }
 0x216   :  { %2511 = vmatpush1.bf16.msra.mxu1 %v2510_v13  ;;  %v1492_v13 = vld [vmem:[%s5347_s3 + $0x358] sm:$0xff]  ;;  %v2630_v15 = vpack.c.bf16 %v1487_v11, %v1485_v10  ;;  %v1519_v10 = vld [vmem:[%s5347_s3 + $0x430] sm:$0xff] }
 0x217   :  { %2513 = vmatprep.subr.bf16.mxu1 %v2512_v16  ;;  %v2632_v16 = vpack.c.bf16 %v1492_v13, %v1490_v12  ;;  %v1522_v12 = vld [vmem:[%s5347_s3 + $0x448] sm:$0xff]  ;;  %v1524_v13 = vld [vmem:[%s5347_s3 + $0x458] sm:$0xff] }
 0x218   :  { %2611 = vmatpush1.bf16.msra.mxu0 %v2610_v25  ;;  %v2634_v25 = vpack.c.bf16 %v1491_v18, %v1489_v17  ;;  %v1526_v17 = vld [vmem:[%s5347_s3 + $0x468] sm:$0xff]  ;;  %v1528_v18 = vld [vmem:[%s5347_s3 + $0x478] sm:$0xff] }
 0x219   :  { %2613 = vmatprep.subr.bf16.mxu0 %v2612_v26  ;;  %v2636_v26 = vpack.c.bf16 %v1496_v24, %v1494_v19  ;;  %v2668_v24 = vpack.c.bf16 %v1528_v18, %v1526_v17  ;;  %v1563_v17 = vld [vmem:[%s5347_s3 + $0x590] sm:$0xff]  ;;  %v1566_v18 = vld [vmem:[%s5347_s3 + $0x5a8] sm:$0xff] }
 0x21a   :  { %2515 = vmatpush1.bf16.msra.mxu1 %v2514_v31  ;;  %v1498_v31 = vld [vmem:[%s5347_s3 + $0x388] sm:$0xff] }
 0x21b   :  { %2517 = vmatprep.subr.bf16.mxu1 %v2516_v8  ;;  %v1497_v8 = vld [vmem:[%s5347_s3 + $0x380] sm:$0xff] }
 0x21c   :  { %2615 = vmatpush1.bf16.msra.mxu0 %v2614_v39  ;;  %v2642_v38 = vpack.c.bf16 %v1499_v34, %v1497_v8  ;;  %v2644_v39 = vpack.c.bf16 %v1504_v36, %v1502_v35  ;;  %v1534_v8 = vld [vmem:[%s5347_s3 + $0x4a8] sm:$0xff]  ;;  %v1536_v34 = vld [vmem:[%s5347_s3 + $0x4b8] sm:$0xff] }
 0x21d   :  { %2617 = vmatprep.subr.bf16.mxu0 %v2616_v40  ;;  %v1501_v40 = vld [vmem:[%s5347_s3 + $0x3a0] sm:$0xff]  ;;  %v2676_v36 = vpack.c.bf16 %v1536_v34, %v1534_v8  ;;  %v1571_v8 = vld [vmem:[%s5347_s3 + $0x5d0] sm:$0xff]  ;;  %v1574_v34 = vld [vmem:[%s5347_s3 + $0x5e8] sm:$0xff] }
 0x21e   :  { %2519 = vmatpush1.bf16.msra.mxu1 %v2518_v47  ;;  %v1508_v47 = vld [vmem:[%s5347_s3 + $0x3d8] sm:$0xff]  ;;  %v2646_v43 = vpack.c.bf16 %v1503_v41, %v1501_v40  ;;  %v1538_v40 = vld [vmem:[%s5347_s3 + $0x4c8] sm:$0xff] }
 0x21f   :  { %2521 = vmatprep.subr.bf16.mxu1 %v2520_v45  ;;  %v2648_v44 = vpack.c.bf16 %v1508_v47, %v1506_v42  ;;  %v1505_v45 = vld [vmem:[%s5347_s3 + $0x3c0] sm:$0xff]  ;;  %v1540_v41 = vld [vmem:[%s5347_s3 + $0x4d8] sm:$0xff] }
 0x220   :  { %2619 = vmatpush1.bf16.msra.mxu0 %v2618_v49  ;;  %v2650_v48 = vpack.c.bf16 %v1507_v46, %v1505_v45  ;;  %v2652_v49 = vpack.c.bf16 %v1512_v52, %v1510_v28  ;;  %v2680_v47 = vpack.c.bf16 %v1540_v41, %v1538_v40  ;;  %v1542_v45 = vld [vmem:[%s5347_s3 + $0x4e8] sm:$0xff]  ;;  %v1544_v46 = vld [vmem:[%s5347_s3 + $0x4f8] sm:$0xff]  ;;  %v1573_v40 = vld [vmem:[%s5347_s3 + $0x5e0] sm:$0xff] }
 0x221   :  { %2621 = vmatprep.subr.bf16.mxu0 %v2620_v50  ;;  %v1509_v50 = vld [vmem:[%s5347_s3 + $0x3e0] sm:$0xff]  ;;  %v2684_v52 = vpack.c.bf16 %v1544_v46, %v1542_v45  ;;  %v1575_v41 = vld [vmem:[%s5347_s3 + $0x5f0] sm:$0xff] }
 0x222   :  { %2523 = vmatpush1.bf16.msra.mxu1 %v2522_v54  ;;  %v1516_v54 = vld [vmem:[%s5347_s3 + $0x418] sm:$0xff]  ;;  %v2654_v55 = vpack.c.bf16 %v1511_v51, %v1509_v50  ;;  %v1546_v50 = vld [vmem:[%s5347_s3 + $0x508] sm:$0xff]  ;;  %v1577_v46 = vld [vmem:[%s5347_s3 + $0x600] sm:$0xff] }
 0x223   :  { %2525 = vmatprep.subr.bf16.mxu1 %v2524_v57  ;;  %v2656_v56 = vpack.c.bf16 %v1516_v54, %v1514_v53  ;;  %v770_v57 = vsub.s32 5, %v3368_v6  ;;  %v1548_v51 = vld [vmem:[%s5347_s3 + $0x518] sm:$0xff] }
 0x224   :  { %2623 = vmatpush1.bf16.msra.mxu0 %v2622_v60  ;;  %v1513_v60 = vld [vmem:[%s5347_s3 + $0x400] sm:$0xff]  ;;  %v2688_v54 = vpack.c.bf16 %v1548_v51, %v1546_v50 }
 0x225   :  { %2625 = vmatprep.subr.bf16.mxu0 %v2624_v61  ;;  %v1515_v61 = vld [vmem:[%s5347_s3 + $0x410] sm:$0xff]  ;;  %v771_v62 = vrot.slane %v4638_v1, %v770_v57  ;;  %v1550_v57 = vld [vmem:[%s5347_s3 + $0x528] sm:$0xff] }
 0x226   :  { %2527 = vmatpush1.bf16.msra.mxu1 %v2526_v0  ;;  %v1518_v0 = vld [vmem:[%s5347_s3 + $0x428] sm:$0xff]  ;;  %v2658_v2 = vpack.c.bf16 %v1515_v61, %v1513_v60  ;;  %v1549_v61 = vld [vmem:[%s5347_s3 + $0x520] sm:$0xff] }
 0x227   :  { %1983 = vmatprep.subr.msk.mxu1 %vm792_vm5, %v745_v3  ;;  %v2781_v11 = vadd.f32 %v4676_v30, %v771_v62  ;;  %v1523_v30 = vld [vmem:[%s5347_s3 + $0x450] sm:$0xff] }
 0x228   :  { %2627 = vmatpush1.bf16.msra.mxu0 %v2626_v4  ;;  %v2660_v4 = vpack.c.bf16 %v1520_v22, %v1518_v0  ;;  %v1551_v62 = vld [vmem:[%s5347_s3 + $0x530] sm:$0xff]  ;;  %v1556_v0 = vld [vmem:[%s5347_s3 + $0x558] sm:$0xff] }
 0x229   :  { %2629 = vmatprep.subr.bf16.mxu0 %v2628_v5  ;;  %v1517_v5 = vld [vmem:[%s5347_s3 + $0x420] sm:$0xff]  ;;  %v2694_v22 = vpack.c.bf16 %v1551_v62, %v1549_v61  ;;  %v1592_v61 = vld [vmem:[%s5347_s3 + $0x678] sm:$0xff] }
 0x22a   :  { %1984 = vmatpush1.msk.msra.mxu1 %vm792_vm5, %v744_v14  ;;  %v2662_v14 = vpack.c.bf16 %v1519_v10, %v1517_v5 }
 0x22b   :  { %1379 = vmatmul.mubr.f32.vlgmr.msra.gmra.mrb[6].mxu1 %v3782_v37  ;;  %v1500_v37 = vld [vmem:[%s5347_s3 + $0x398] sm:$0xff] }
 0x22c   :  { %2631 = vmatpush1.bf16.msra.mxu0 %v2630_v15  ;;  %v2640_v33 = vpack.c.bf16 %v1500_v37, %v1498_v31  ;;  %v2664_v15 = vpack.c.bf16 %v1524_v13, %v1522_v12  ;;  %v2672_v37 = vpack.c.bf16 %v1532_v29, %v1530_v27  ;;  %v1559_v12 = vld [vmem:[%s5347_s3 + $0x570] sm:$0xff]  ;;  %v1562_v13 = vld [vmem:[%s5347_s3 + $0x588] sm:$0xff] }
 0x22d   :  { %2633 = vmatprep.subr.bf16.mxu0 %v2632_v16  ;;  %v1521_v16 = vld [vmem:[%s5347_s3 + $0x440] sm:$0xff]  ;;  %v1567_v27 = vld [vmem:[%s5347_s3 + $0x5b0] sm:$0xff]  ;;  %v1570_v29 = vld [vmem:[%s5347_s3 + $0x5c8] sm:$0xff] }
 0x22e   :  { %v2666_v19 = vpack.c.bf16 %v1523_v30, %v1521_v16  ;;  %v1561_v30 = vld [vmem:[%s5347_s3 + $0x580] sm:$0xff] }
 0x230   :  { %2635 = vmatpush1.bf16.msra.mxu0 %v2634_v25  ;;  %v1525_v25 = vld [vmem:[%s5347_s3 + $0x460] sm:$0xff] }
 0x231   :  { %2637 = vmatprep.subr.bf16.mxu0 %v2636_v26  ;;  %v1527_v26 = vld [vmem:[%s5347_s3 + $0x470] sm:$0xff] }
 0x232   :  { %v2670_v31 = vpack.c.bf16 %v1527_v26, %v1525_v25  ;;  %v1565_v26 = vld [vmem:[%s5347_s3 + $0x5a0] sm:$0xff] }
 0x234   :  { %2639 = vmatpush1.bf16.msra.mxu0 %v2638_v32  ;;  %v1529_v32 = vld [vmem:[%s5347_s3 + $0x480] sm:$0xff] }
 0x235   :  { %2641 = vmatprep.subr.bf16.mxu0 %v2640_v33  ;;  %v1531_v33 = vld [vmem:[%s5347_s3 + $0x490] sm:$0xff] }
 0x236   :  { %v2674_v35 = vpack.c.bf16 %v1531_v33, %v1529_v32  ;;  %v1569_v33 = vld [vmem:[%s5347_s3 + $0x5c0] sm:$0xff] }
 0x238   :  { %2643 = vmatpush1.bf16.msra.mxu0 %v2642_v38  ;;  %v1533_v38 = vld [vmem:[%s5347_s3 + $0x4a0] sm:$0xff] }
 0x239   :  { %2645 = vmatprep.subr.bf16.mxu0 %v2644_v39  ;;  %v1535_v39 = vld [vmem:[%s5347_s3 + $0x4b0] sm:$0xff] }
 0x23a   :  { %v2678_v42 = vpack.c.bf16 %v1535_v39, %v1533_v38  ;;  %v766_v38 = vsub.s32 4, %v3368_v6 }
 0x23c   :  { %2647 = vmatpush1.bf16.msra.mxu0 %v2646_v43  ;;  %v1537_v43 = vld [vmem:[%s5347_s3 + $0x4c0] sm:$0xff] }
 0x23d   :  { %2649 = vmatprep.subr.bf16.mxu0 %v2648_v44  ;;  %v1539_v44 = vld [vmem:[%s5347_s3 + $0x4d0] sm:$0xff] }
 0x23e   :  { %v2682_v28 = vpack.c.bf16 %v1539_v44, %v1537_v43  ;;  %v2718_v43 = vpack.c.bf16 %v1575_v41, %v1573_v40  ;;  %v767_v44 = vrot.slane %v4638_v1, %v766_v38  ;;  %v1614_v38 = vld [vmem:[%s5347_s3 + $0x728] sm:$0xff] }
 0x240   :  { %2651 = vmatpush1.bf16.msra.mxu0 %v2650_v48  ;;  %v1541_v48 = vld [vmem:[%s5347_s3 + $0x4e0] sm:$0xff]  ;;  %v2780_v50 = vadd.f32 %v4668_v21, %v767_v44  ;;  %v1620_v44 = vld [vmem:[%s5347_s3 + $0x758] sm:$0xff] }
 0x241   :  { %2653 = vmatprep.subr.bf16.mxu0 %v2652_v49  ;;  %v1543_v49 = vld [vmem:[%s5347_s3 + $0x4f0] sm:$0xff] }
 0x242   :  { %v2686_v53 = vpack.c.bf16 %v1543_v49, %v1541_v48  ;;  %v1584_v48 = vld [vmem:[%s5347_s3 + $0x638] sm:$0xff] }
 0x244   :  { %2655 = vmatpush1.bf16.msra.mxu0 %v2654_v55  ;;  %v1545_v55 = vld [vmem:[%s5347_s3 + $0x500] sm:$0xff] }
 0x245   :  { %2657 = vmatprep.subr.bf16.mxu0 %v2656_v56  ;;  %v1547_v56 = vld [vmem:[%s5347_s3 + $0x510] sm:$0xff] }
 0x280   :  { %v1096_v63 = vpop.f32.mrb[4].mxu1 }
 0x281   :  { %v1098_v20 = vpop.f32.mrb[5].mxu1  ;;  %v2778_v3 = vadd.f32 %v1096_v63, %v759_v59  ;;  %v2690_v59 = vpack.c.bf16 %v1547_v56, %v1545_v55  ;;  %v1554_v63 = vld [vmem:[%s5347_s3 + $0x548] sm:$0xff]  ;;  %v1588_v56 = vld [vmem:[%s5347_s3 + $0x658] sm:$0xff] }
 0x282   :  { %v2779_v23 = vadd.f32 %v1098_v20, %v763_v58  ;;  %v1552_v58 = vld [vmem:[%s5347_s3 + $0x538] sm:$0xff]  ;;  %v2696_v20 = vpack.c.bf16 %v1556_v0, %v1554_v63  ;;  %v1586_v55 = vld [vmem:[%s5347_s3 + $0x648] sm:$0xff]  ;;  %v1589_v0 = vld [vmem:[%s5347_s3 + $0x660] sm:$0xff] }
 0x283   :  { %v2692_v60 = vpack.c.bf16 %v1552_v58, %v1550_v57  ;;  %v2728_v57 = vpack.c.bf16 %v1588_v56, %v1586_v55  ;;  %v1585_v58 = vld [vmem:[%s5347_s3 + $0x640] sm:$0xff]  ;;  %v1626_v55 = vld [vmem:[%s5347_s3 + $0x788] sm:$0xff]  ;;  %v1628_v56 = vld [vmem:[%s5347_s3 + $0x798] sm:$0xff] }
 0x284   :  { %1786 = vmatprep.mubr.f32.mxu0 %v2779_v23  ;;  %v1553_v23 = vld [vmem:[%s5347_s3 + $0x540] sm:$0xff] }
 0x285   :  { %1787 = vmatmul.mubr.f32.vlgmr.msra.gmra.mrb[4].mxu0 %v2778_v3  ;;  %v1558_v3 = vld [vmem:[%s5347_s3 + $0x568] sm:$0xff] }
 0x286   :  { %2659 = vmatpush1.bf16.msra.mxu0 %v2658_v2  ;;  %1857 = vmatprep.mubr.f32.mxu0 %v2781_v11  ;;  %v1555_v2 = vld [vmem:[%s5347_s3 + $0x550] sm:$0xff]  ;;  %v1557_v11 = vld [vmem:[%s5347_s3 + $0x560] sm:$0xff] }
 0x287   :  { %2661 = vmatprep.subr.bf16.mxu0 %v2660_v4  ;;  %v1560_v4 = vld [vmem:[%s5347_s3 + $0x578] sm:$0xff]  ;;  %v2698_v5 = vpack.c.bf16 %v1555_v2, %v1553_v23 }
 0x288   :  { %v2700_v10 = vpack.c.bf16 %v1560_v4, %v1558_v3  ;;  %v1596_v23 = vld [vmem:[%s5347_s3 + $0x698] sm:$0xff]  ;;  %v1593_v4 = vld [vmem:[%s5347_s3 + $0x680] sm:$0xff] }
 0x28a   :  { %2663 = vmatpush1.bf16.msra.mxu0 %v2662_v14  ;;  %v1564_v14 = vld [vmem:[%s5347_s3 + $0x598] sm:$0xff] }
 0x28b   :  { %2665 = vmatprep.subr.bf16.mxu0 %v2664_v15  ;;  %v2702_v15 = vpack.c.bf16 %v1559_v12, %v1557_v11  ;;  %v2704_v16 = vpack.c.bf16 %v1564_v14, %v1562_v13  ;;  %v1600_v11 = vld [vmem:[%s5347_s3 + $0x6b8] sm:$0xff]  ;;  %v1597_v14 = vld [vmem:[%s5347_s3 + $0x6a0] sm:$0xff] }
 0x28e   :  { %2667 = vmatpush1.bf16.msra.mxu0 %v2666_v19  ;;  %v1568_v19 = vld [vmem:[%s5347_s3 + $0x5b8] sm:$0xff] }
 0x28f   :  { %2669 = vmatprep.subr.bf16.mxu0 %v2668_v24  ;;  %v2706_v24 = vpack.c.bf16 %v1563_v17, %v1561_v30  ;;  %v2708_v25 = vpack.c.bf16 %v1568_v19, %v1566_v18  ;;  %v1604_v30 = vld [vmem:[%s5347_s3 + $0x6d8] sm:$0xff]  ;;  %v1601_v19 = vld [vmem:[%s5347_s3 + $0x6c0] sm:$0xff] }
 0x292   :  { %2671 = vmatpush1.bf16.msra.mxu0 %v2670_v31  ;;  %v1572_v31 = vld [vmem:[%s5347_s3 + $0x5d8] sm:$0xff] }
 0x293   :  { %2673 = vmatprep.subr.bf16.mxu0 %v2672_v37  ;;  %v2710_v37 = vpack.c.bf16 %v1567_v27, %v1565_v26  ;;  %v2712_v32 = vpack.c.bf16 %v1572_v31, %v1570_v29  ;;  %v1608_v26 = vld [vmem:[%s5347_s3 + $0x6f8] sm:$0xff]  ;;  %v1605_v31 = vld [vmem:[%s5347_s3 + $0x6e0] sm:$0xff] }
 0x296   :  { %2675 = vmatpush1.bf16.msra.mxu0 %v2674_v35  ;;  %v1576_v35 = vld [vmem:[%s5347_s3 + $0x5f8] sm:$0xff] }
 0x297   :  { %2677 = vmatprep.subr.bf16.mxu0 %v2676_v36  ;;  %v2714_v36 = vpack.c.bf16 %v1571_v8, %v1569_v33  ;;  %v2716_v39 = vpack.c.bf16 %v1576_v35, %v1574_v34  ;;  %v1612_v33 = vld [vmem:[%s5347_s3 + $0x718] sm:$0xff]  ;;  %v1609_v35 = vld [vmem:[%s5347_s3 + $0x700] sm:$0xff] }
 0x29a   :  { %2679 = vmatpush1.bf16.msra.mxu0 %v2678_v42  ;;  %v1578_v42 = vld [vmem:[%s5347_s3 + $0x608] sm:$0xff] }
 0x29b   :  { %2681 = vmatprep.subr.bf16.mxu0 %v2680_v47  ;;  %v1580_v47 = vld [vmem:[%s5347_s3 + $0x618] sm:$0xff] }
 0x29c   :  { %v2720_v45 = vpack.c.bf16 %v1580_v47, %v1578_v42  ;;  %v1613_v42 = vld [vmem:[%s5347_s3 + $0x720] sm:$0xff]  ;;  %v1615_v47 = vld [vmem:[%s5347_s3 + $0x730] sm:$0xff] }
 0x29e   :  { %2683 = vmatpush1.bf16.msra.mxu0 %v2682_v28  ;;  %v1579_v28 = vld [vmem:[%s5347_s3 + $0x610] sm:$0xff] }
 0x29f   :  { %2685 = vmatprep.subr.bf16.mxu0 %v2684_v52  ;;  %v1582_v52 = vld [vmem:[%s5347_s3 + $0x628] sm:$0xff]  ;;  %v2722_v49 = vpack.c.bf16 %v1579_v28, %v1577_v46  ;;  %v1617_v28 = vld [vmem:[%s5347_s3 + $0x740] sm:$0xff] }
 0x2a0   :  { %v2724_v51 = vpack.c.bf16 %v1584_v48, %v1582_v52  ;;  %v1619_v52 = vld [vmem:[%s5347_s3 + $0x750] sm:$0xff]  ;;  %v1622_v48 = vld [vmem:[%s5347_s3 + $0x768] sm:$0xff] }
 0x2a2   :  { %2687 = vmatpush1.bf16.msra.mxu0 %v2686_v53  ;;  %v1581_v53 = vld [vmem:[%s5347_s3 + $0x620] sm:$0xff] }
 0x2a3   :  { %2689 = vmatprep.subr.bf16.mxu0 %v2688_v54  ;;  %v1583_v54 = vld [vmem:[%s5347_s3 + $0x630] sm:$0xff] }
 0x2a4   :  { %v2726_v21 = vpack.c.bf16 %v1583_v54, %v1581_v53  ;;  %v1621_v53 = vld [vmem:[%s5347_s3 + $0x760] sm:$0xff]  ;;  %v1623_v54 = vld [vmem:[%s5347_s3 + $0x770] sm:$0xff] }
 0x2a6   :  { %2691 = vmatpush1.bf16.msra.mxu0 %v2690_v59  ;;  %v1587_v59 = vld [vmem:[%s5347_s3 + $0x650] sm:$0xff] }
 0x2a7   :  { %2693 = vmatprep.subr.bf16.mxu0 %v2692_v60  ;;  %v1590_v60 = vld [vmem:[%s5347_s3 + $0x668] sm:$0xff]  ;;  %v2730_v62 = vpack.c.bf16 %v1587_v59, %v1585_v58  ;;  %v1625_v58 = vld [vmem:[%s5347_s3 + $0x780] sm:$0xff]  ;;  %v1627_v59 = vld [vmem:[%s5347_s3 + $0x790] sm:$0xff] }
 0x2a8   :  { %v2732_v63 = vpack.c.bf16 %v1592_v61, %v1590_v60  ;;  %v1630_v60 = vld [vmem:[%s5347_s3 + $0x7a8] sm:$0xff]  ;;  %v1632_v61 = vld [vmem:[%s5347_s3 + $0x7b8] sm:$0xff] }
 0x2aa   :  { %2695 = vmatpush1.bf16.msra.mxu0 %v2694_v22  ;;  %v1591_v22 = vld [vmem:[%s5347_s3 + $0x670] sm:$0xff] }
 0x2ab   :  { %2697 = vmatprep.subr.bf16.mxu0 %v2696_v20  ;;  %v1594_v20 = vld [vmem:[%s5347_s3 + $0x688] sm:$0xff]  ;;  %v2734_v2 = vpack.c.bf16 %v1591_v22, %v1589_v0  ;;  %v1629_v0 = vld [vmem:[%s5347_s3 + $0x7a0] sm:$0xff]  ;;  %v1631_v22 = vld [vmem:[%s5347_s3 + $0x7b0] sm:$0xff] }
 0x2ac   :  { %v2736_v3 = vpack.c.bf16 %v1596_v23, %v1594_v20  ;;  %v2774_v20 = vpack.c.bf16 %v1631_v22, %v1629_v0  ;;  %v778_v23 = vsub.s32 7, %v3368_v6 }
 0x2ae   :  { %2699 = vmatpush1.bf16.msra.mxu0 %v2698_v5  ;;  %v1595_v5 = vld [vmem:[%s5347_s3 + $0x690] sm:$0xff] }
 0x2af   :  { %2701 = vmatprep.subr.bf16.mxu0 %v2700_v10  ;;  %v1598_v10 = vld [vmem:[%s5347_s3 + $0x6a8] sm:$0xff]  ;;  %v2738_v12 = vpack.c.bf16 %v1595_v5, %v1593_v4  ;;  %v1633_v4 = vld [vmem:[%s5347_s3 + $0x7c0] sm:$0xff]  ;;  %v779_v5 = vrot.slane %v4638_v1, %v778_v23 }
 0x2b0   :  { %v2740_v13 = vpack.c.bf16 %v1600_v11, %v1598_v10 }
 0x2b2   :  { %2703 = vmatpush1.bf16.msra.mxu0 %v2702_v15  ;;  %v1599_v15 = vld [vmem:[%s5347_s3 + $0x6b0] sm:$0xff] }
 0x2b3   :  { %2705 = vmatprep.subr.bf16.mxu0 %v2704_v16  ;;  %v1602_v16 = vld [vmem:[%s5347_s3 + $0x6c8] sm:$0xff]  ;;  %v2742_v17 = vpack.c.bf16 %v1599_v15, %v1597_v14 }
 0x2b4   :  { %v2744_v18 = vpack.c.bf16 %v1604_v30, %v1602_v16  ;;  %v1935_v16 = vld [vmem:[%s5346_s4 + $0xe] sm:$0x3] }
 0x2b6   :  { %2707 = vmatpush1.bf16.msra.mxu0 %v2706_v24  ;;  %v1603_v24 = vld [vmem:[%s5347_s3 + $0x6d0] sm:$0xff] }
 0x2b7   :  { %2709 = vmatprep.subr.bf16.mxu0 %v2708_v25  ;;  %v1606_v25 = vld [vmem:[%s5347_s3 + $0x6e8] sm:$0xff]  ;;  %v2746_v27 = vpack.c.bf16 %v1603_v24, %v1601_v19  ;;  %v1941_v24 = vrot.slane %v1935_v16, %v3379_v9 }
 0x2b8   :  { %v2748_v29 = vpack.c.bf16 %v1608_v26, %v1606_v25 }
 0x2ba   :  { %2711 = vmatpush1.bf16.msra.mxu0 %v2710_v37  ;;  %v1607_v37 = vld [vmem:[%s5347_s3 + $0x6f0] sm:$0xff] }
 0x2bb   :  { %2713 = vmatprep.subr.bf16.mxu0 %v2712_v32  ;;  %v1610_v32 = vld [vmem:[%s5347_s3 + $0x708] sm:$0xff]  ;;  %v2750_v8 = vpack.c.bf16 %v1607_v37, %v1605_v31  ;;  %v1987_v37 = vld [vmem:[%s5346_s4 + $0x10] ss:$0 sm:$0xff] }
 0x2bc   :  { %v2752_v34 = vpack.c.bf16 %v1612_v33, %v1610_v32 }
 0x2be   :  { %2715 = vmatpush1.bf16.msra.mxu0 %v2714_v36  ;;  %v1611_v36 = vld [vmem:[%s5347_s3 + $0x710] sm:$0xff] }
 0x2bf   :  { %2717 = vmatprep.subr.bf16.mxu0 %v2716_v39  ;;  %v1616_v39 = vld [vmem:[%s5347_s3 + $0x738] sm:$0xff]  ;;  %v2754_v40 = vpack.c.bf16 %v1611_v36, %v1609_v35 }
 0x2c0   :  { %v2756_v41 = vpack.c.bf16 %v1616_v39, %v1614_v38 }
 0x2c2   :  { %2719 = vmatpush1.bf16.msra.mxu0 %v2718_v43  ;;  %v1618_v43 = vld [vmem:[%s5347_s3 + $0x748] sm:$0xff] }
 0x2c3   :  { %2721 = vmatprep.subr.bf16.mxu0 %v2720_v45  ;;  %v2758_v45 = vpack.c.bf16 %v1615_v47, %v1613_v42  ;;  %v2760_v46 = vpack.c.bf16 %v1620_v44, %v1618_v43 }
 0x2c5   :  { %1858 = vmatmul.mubr.f32.vlgmr.msra.gmra.mrb[4].mxu0 %v2780_v50  ;;  %v2762_v50 = vpack.c.bf16 %v1619_v52, %v1617_v28 }
 0x2c6   :  { %2723 = vmatpush1.bf16.msra.mxu0 %v2722_v49  ;;  %v1624_v49 = vld [vmem:[%s5347_s3 + $0x778] sm:$0xff] }
 0x2c7   :  { %2725 = vmatprep.subr.bf16.mxu0 %v2724_v51  ;;  %v2764_v51 = vpack.c.bf16 %v1624_v49, %v1622_v48 }
 0x2ca   :  { %2727 = vmatpush1.bf16.msra.mxu0 %v2726_v21  ;;  %v2766_v21 = vpack.c.bf16 %v1623_v54, %v1621_v53 }
 0x2cb   :  { %2729 = vmatprep.subr.bf16.mxu0 %v2728_v57  ;;  %v2768_v57 = vpack.c.bf16 %v1628_v56, %v1626_v55 }
 0x2ce   :  { %2731 = vmatpush1.bf16.msra.mxu0 %v2730_v62  ;;  %v2770_v62 = vpack.c.bf16 %v1627_v59, %v1625_v58 }
 0x2cf   :  { %2733 = vmatprep.subr.bf16.mxu0 %v2732_v63  ;;  %v2772_v63 = vpack.c.bf16 %v1632_v61, %v1630_v60 }
 0x2d2   :  { %2735 = vmatpush1.bf16.msra.mxu0 %v2734_v2  ;;  %v1634_v2 = vld [vmem:[%s5347_s3 + $0x7c8] sm:$0xff] }
 0x2d3   :  { %2737 = vmatprep.subr.bf16.mxu0 %v2736_v3  ;;  %v774_v3 = vsub.s32 6, %v3368_v6  ;;  %v1635_v6 = vld [vmem:[%s5346_s4 + $0xc] sm:$0x3] }
 0x2d4   :  { %v1640_v15 = vrot.slane %v1635_v6, %v3379_v9 }
 0x2d5   :  { %v775_v10 = vrot.slane %v4638_v1, %v774_v3  ;;  %v1644_v1 = vrot.slane %v1635_v6, %v3371_v7 }
 0x2d6   :  { %2739 = vmatpush1.bf16.msra.mxu0 %v2738_v12 }
 0x2d7   :  { %2741 = vmatprep.subr.bf16.mxu0 %v2740_v13 }
 0x2da   :  { %2743 = vmatpush1.bf16.msra.mxu0 %v2742_v17  ;;  %v1945_v17 = vrot.slane %v1935_v16, %v3371_v7 }
 0x2db   :  { %2745 = vmatprep.subr.bf16.mxu0 %v2744_v18 }
 0x2de   :  { %2747 = vmatpush1.bf16.msra.mxu0 %v2746_v27 }
 0x2df   :  { %2749 = vmatprep.subr.bf16.mxu0 %v2748_v29 }
 0x2e2   :  { %2751 = vmatpush1.bf16.msra.mxu0 %v2750_v8 }
 0x2e3   :  { %2753 = vmatprep.subr.bf16.mxu0 %v2752_v34 }
 0x2e6   :  { %2755 = vmatpush1.bf16.msra.mxu0 %v2754_v40 }
 0x2e7   :  { %2757 = vmatprep.subr.bf16.mxu0 %v2756_v41 }
 0x2ea   :  { %2759 = vmatpush1.bf16.msra.mxu0 %v2758_v45 }
 0x2eb   :  { %2761 = vmatprep.subr.bf16.mxu0 %v2760_v46 }
 0x2ee   :  { %2763 = vmatpush1.bf16.msra.mxu0 %v2762_v50 }
 0x2ef   :  { %2765 = vmatprep.subr.bf16.mxu0 %v2764_v51 }
 0x2f2   :  { %2767 = vmatpush1.bf16.msra.mxu0 %v2766_v21 }
 0x2f3   :  { %2769 = vmatprep.subr.bf16.mxu0 %v2768_v57 }
 0x2f6   :  { %2771 = vmatpush1.bf16.msra.mxu0 %v2770_v62 }
 0x2f7   :  { %2773 = vmatprep.subr.bf16.mxu0 %v2772_v63 }
 0x2fa   :  { %2775 = vmatpush1.bf16.msra.mxu0 %v2774_v20 }
 0x2fb   :  { %1920 = vmatprep.subr.mxu0 %v1634_v2 }
 0x2fe   :  { %v1380_v11 = vpop.f32.mrb[6].mxu1  ;;  %1921 = vmatpush1.msra.mxu0 %v1633_v4 }
 0x2ff   :  { %v1382_v12 = vpop.f32.mrb[7].mxu1  ;;  %v2782_v14 = vadd.f32 %v1380_v11, %v775_v10 }
 0x300   :  { %v2783_v13 = vadd.f32 %v1382_v12, %v779_v5 }
 0x302   :  { %1986 = vmatprep.mubr.msk.f32.mxu0 %vm1647_vm6, %v2783_v13 }
 0x303   :  { %1929 = vmatmul.mubr.f32.vlgmr.msra.gmra.mrb[4].mxu0 %v2782_v14 }
 0x3d6   :  { %v1930_v30 = vpop.f32.mrb[4].mxu0 }
 0x3d7   :  { %v2784_v18 = vadd.f32 %v1930_v30, %v1640_v15  ;;  %v1932_v19 = vpop.f32.mrb[5].mxu0 }
 0x3d8   :  { %v2785_v25 = vadd.f32 %v1932_v19, %v1644_v1 }
 0x3d9   :  { %v1948_v27 = vmul.f32 %v2784_v18, %v1941_v24 }
 0x3da   :  { %v1949_v26 = vmul.f32 %v2785_v25, %v1945_v17 }
 0x3dc   :  { %v1951_v29 = vsel %vm1950_vm7, %v1949_v26, 0.0 }
 0x3dd   :  { %v1952_v31 = vadd.f32 %v1951_v29, %v1948_v27 }
 0x3df   :  { %1953 = vadd.xlane.f32.xlu0 %v1952_v31 }
 0x46c   :  { %v1954_v32 = vpop.xlane.xlu0 %1953 }
 0x46d   :  { %v1961_v33 = vadd.f32 %v1987_v37, %v1954_v32 }
 0x46f   :  { %1963 = vst.msk [vmem:[%s5348_s5] sm:$0xff] %vm1962_vm8, %v1961_v33 }

</bundles_post_ra>
